<compile_context>
chip_gen: v5e
topology: v5e:2x2
jax: 0.10.0
libtpu: 0.0.40
codegen_flags: <defaults>
</compile_context>

<pallas_src>
import jax
import jax.numpy as jnp
from jax import lax
from jax.experimental import pallas as pl
from jax.experimental.pallas import tpu as pltpu


def _cdiv(a, b):
    return -(-a // b)


def _device_kind():
    try:
        return jax.devices()[0].device_kind.lower()
    except Exception:
        return ""


def lstm_pool_kernel(seq_ref, seqt_ref, src_ref,
                     w_ih_a_ref, w_ih_b_ref, w_hh_ref, b_g_ref,
                     fc1_wa_ref, fc1_wb_ref, fc1_b_ref,
                     fc2_w_ref, fc2_b_ref,
                     out_ref,
                     gx_scr):
    """LSTM recurrence + MergeLayer MLP for one batch block.

    seq_ref   : [L, B_blk, F]   time-major, bf16
    seqt_ref  : [L, B_blk, T]   time-major, bf16
    src_ref   : [B_blk, F]      f32
    w_ih_a    : [F, 4H] bf16    (acts on seq)      w_ih_b: [T, 4H] bf16 (seq_t)
    w_hh      : [H, 4H] bf16    b_g: [1, 4H] f32   (g-gate columns pre-scaled x2)
    fc1_wa/wb : [F, F] f32      (fc1 weight split so cat([hn,src]) is two dots)
    fc2_w     : [F, F] f32
    out_ref   : [B_blk, F] f32
    gx_scr    : VMEM [L*B_blk, 4H] bf16 — hoisted input projection (+bias).
    """
    L, Bblk, _ = seq_ref.shape
    H = w_hh_ref.shape[0]

    # ---- 1) Hoisted input projection: one big MXU matmul (M = L*Bblk). ----
    # concat([seq, seq_t], -1) is folded into two dots against the split W_ih.
    x_all = seq_ref[...].reshape(L * Bblk, seq_ref.shape[2])      # tile-aligned collapse
    t_all = seqt_ref[...].reshape(L * Bblk, seqt_ref.shape[2])
    gx = (jnp.dot(x_all, w_ih_a_ref[...], preferred_element_type=jnp.float32)
          + jnp.dot(t_all, w_ih_b_ref[...], preferred_element_type=jnp.float32))
    gx_scr[...] = (gx + b_g_ref[...]).astype(gx_scr.dtype)        # bias folded once, bf16

    # ---- 2) Recurrence, state carried in registers (f32). ----
    def step(t, carry):
        h, c = carry
        row0 = pl.multiple_of(t * Bblk, Bblk)                      # aligned slice start
        gates = (gx_scr[pl.ds(row0, Bblk), :].astype(jnp.float32)
                 + jnp.dot(h.astype(jnp.bfloat16), w_hh_ref[...],
                           preferred_element_type=jnp.float32))    # [Bblk, 4H]
        # Single EUP pass over the full 4H slab.  PyTorch gate order: i,f,g,o.
        sig = jax.nn.sigmoid(gates)
        i = sig[:, 0 * H:1 * H]
        f = sig[:, 1 * H:2 * H]
        g = 2.0 * sig[:, 2 * H:3 * H] - 1.0      # tanh(x) = 2*sigmoid(2x)-1 (2x pre-folded)
        o = sig[:, 3 * H:4 * H]
        c_new = f * c + i * g
        h_new = o * jnp.tanh(c_new)
        return h_new, c_new

    h0 = jnp.zeros((Bblk, H), jnp.float32)
    c0 = jnp.zeros((Bblk, H), jnp.float32)
    hn, _ = lax.fori_loop(0, L, step, (h0, c0),
                          unroll=True if L <= 16 else 4)

    # ---- 3) MergeLayer: fc2(relu(fc1(cat([hn, src], dim=1)))). ----
    h1 = (jnp.dot(hn, fc1_wa_ref[...], preferred_element_type=jnp.float32)
          + jnp.dot(src_ref[...], fc1_wb_ref[...],
                    preferred_element_type=jnp.float32)
          + fc1_b_ref[...])
    h1 = jnp.maximum(h1, 0.0)
    out_ref[...] = (jnp.dot(h1, fc2_w_ref[...],
                            preferred_element_type=jnp.float32)
                    + fc2_b_ref[...])


def _choose_blocking(B, L, F, T, H, vmem_cap_bytes, min_blocks):
    """Device-aware batch blocking: multiples of 16 rows, VMEM-bounded."""
    B16 = ((max(B, 1) + 15) // 16) * 16
    per_row = (2 * L * (F + T) * 2      # seq + seq_t blocks (bf16, double-buffered)
               + 2 * F * 4              # src block (f32, double-buffered)
               + 2 * F * 4              # out block (f32, double-buffered)
               + L * 4 * H * 2)         # gx scratch (bf16)
    weight_bytes = 2 * ((F + T + H) * 4 * H * 2      # w_ih_a/b + w_hh (bf16)
                        + 4 * H * 4                  # b_g
                        + 3 * F * F * 4 + 2 * F * 4)  # MergeLayer
    headroom = 2 << 20
    budget = max(vmem_cap_bytes - weight_bytes - headroom, 1 << 20)
    max_rows = max(16, (budget // per_row) // 16 * 16)
    n_blocks = max(min_blocks, _cdiv(B16, max_rows))
    B_blk = ((_cdiv(B16, n_blocks) + 15) // 16) * 16
    B_pad = n_blocks * B_blk
    vmem_est = int(weight_bytes + B_blk * per_row + headroom)
    return B_blk, B_pad, n_blocks, vmem_est


def init_params(key, feat_dim, time_dim):
    """Deterministic synthetic parameters matching the PyTorch module shapes."""
    att_dim = feat_dim + time_dim
    H = feat_dim
    ks = jax.random.split(key, 8)
    s_lstm = 1.0 / jnp.sqrt(H)
    s_fc1 = 1.0 / jnp.sqrt(2 * feat_dim)
    s_fc2 = 1.0 / jnp.sqrt(feat_dim)
    u = lambda k, shape, s: jax.random.uniform(k, shape, jnp.float32, -s, s)
    return {
        # nn.LSTM layer-0 params
        "w_ih": u(ks[0], (4 * H, att_dim), s_lstm),
        "w_hh": u(ks[1], (4 * H, H), s_lstm),
        "b_ih": u(ks[2], (4 * H,), s_lstm),
        "b_hh": u(ks[3], (4 * H,), s_lstm),
        # MergeLayer: fc1(2F -> F), fc2(F -> F)
        "fc1_w": u(ks[4], (feat_dim, 2 * feat_dim), s_fc1),
        "fc1_b": u(ks[5], (feat_dim,), s_fc1),
        "fc2_w": u(ks[6], (feat_dim, feat_dim), s_fc2),
        "fc2_b": u(ks[7], (feat_dim,), s_fc2),
    }


def lstm_pool(src, src_t, seq, seq_t, mask, params):
    """Pallas-backed LSTMPool.forward. src_t and mask are unused (as in PyTorch)."""
    del src_t, mask  # unused by the reference forward
    B, L, F = seq.shape
    T = seq_t.shape[2]
    H = F

    # ---- device-aware blocking / VMEM caps ----
    kind = _device_kind()
    is_v7 = ("v7" in kind) or ("7x" in kind)
    vmem_cap = (48 << 20) if is_v7 else (100 << 20)   # v7x: 64 MiB phys; v5e/v6e: 128 MiB
    min_blocks = 2 if is_v7 else 1                    # keep both v7x TensorCores busy
    B_blk, B_pad, n_blocks, vmem_est = _choose_blocking(
        B, L, F, T, H, vmem_cap, min_blocks)
    vmem_limit = int(min(vmem_cap, max(vmem_est, 16 << 20)))

    # ---- glue: time-major transpose fused with bf16 cast; NO concat pass ----
    seq_tm = jnp.transpose(seq, (1, 0, 2)).astype(jnp.bfloat16)    # [L, B, F]
    seqt_tm = jnp.transpose(seq_t, (1, 0, 2)).astype(jnp.bfloat16)  # [L, B, T]
    src_p = src.astype(jnp.float32)
    if B_pad != B:
        # Padded rows produce nonzero (bias-driven) outputs; they are sliced off.
        seq_tm = jnp.pad(seq_tm, ((0, 0), (0, B_pad - B), (0, 0)))
        seqt_tm = jnp.pad(seqt_tm, ((0, 0), (0, B_pad - B), (0, 0)))
        src_p = jnp.pad(src_p, ((0, B_pad - B), (0, 0)))

    # ---- parameter prep: transpose to [in,out]; fold the tanh->sigmoid rewrite
    #      by pre-scaling the g-gate columns (2H:3H) of W_ih, W_hh AND the bias by 2.
    gscale = jnp.concatenate([jnp.ones((2 * H,), jnp.float32),
                              jnp.full((H,), 2.0, jnp.float32),
                              jnp.ones((H,), jnp.float32)])            # [4H]
    w_ih_t = params["w_ih"].T.astype(jnp.float32) * gscale[None, :]    # [F+T, 4H]
    w_ih_a = w_ih_t[:F].astype(jnp.bfloat16)                           # acts on seq
    w_ih_b = w_ih_t[F:].astype(jnp.bfloat16)                           # acts on seq_t
    w_hh_t = (params["w_hh"].T.astype(jnp.float32)
              * gscale[None, :]).astype(jnp.bfloat16)                  # [H, 4H]
    b_g = ((params["b_ih"] + params["b_hh"]).astype(jnp.float32)
           * gscale)[None, :]                                          # [1, 4H]
    fc1_w_t = params["fc1_w"].T.astype(jnp.float32)                    # [2F, F]
    fc1_wa = fc1_w_t[:F, :]                                            # acts on hn
    fc1_wb = fc1_w_t[F:, :]                                            # acts on src
    fc1_b = params["fc1_b"][None, :].astype(jnp.float32)
    fc2_w_t = params["fc2_w"].T.astype(jnp.float32)
    fc2_b = params["fc2_b"][None, :].astype(jnp.float32)

    weight_bytes = ((F + T + H) * 4 * H * 2 + 4 * H * 4
                    + 3 * F * F * 4 + 2 * F * 4)
    cost = pl.CostEstimate(
        flops=int(2 * L * B_pad * (F + T) * 4 * H      # input projection
                  + 2 * L * B_pad * H * 4 * H          # recurrent matmul
                  + 2 * B_pad * 3 * F * F),            # MergeLayer
        transcendentals=int(L * B_pad * 5 * H),        # sigmoid(4H slab) + tanh(c)
        bytes_accessed=int(seq_tm.size * 2 + seqt_tm.size * 2
                           + src_p.size * 4 + B_pad * F * 4 + weight_bytes),
    )

    grid_spec = pltpu.PrefetchScalarGridSpec(
        num_scalar_prefetch=0,
        grid=(n_blocks,),
        in_specs=[
            pl.BlockSpec((L, B_blk, F), lambda b: (0, b, 0)),      # seq (time-major)
            pl.BlockSpec((L, B_blk, T), lambda b: (0, b, 0)),      # seq_t (time-major)
            pl.BlockSpec((B_blk, F), lambda b: (b, 0)),            # src
            pl.BlockSpec((F, 4 * H), lambda b: (0, 0)),            # w_ih_a
            pl.BlockSpec((T, 4 * H), lambda b: (0, 0)),            # w_ih_b
            pl.BlockSpec((H, 4 * H), lambda b: (0, 0)),            # w_hh
            pl.BlockSpec((1, 4 * H), lambda b: (0, 0)),            # b_g
            pl.BlockSpec((F, F), lambda b: (0, 0)),                # fc1_wa
            pl.BlockSpec((F, F), lambda b: (0, 0)),                # fc1_wb
            pl.BlockSpec((1, F), lambda b: (0, 0)),                # fc1_b
            pl.BlockSpec((F, F), lambda b: (0, 0)),                # fc2_w
            pl.BlockSpec((1, F), lambda b: (0, 0)),                # fc2_b
        ],
        out_specs=pl.BlockSpec((B_blk, F), lambda b: (b, 0)),
        scratch_shapes=[pltpu.VMEM((L * B_blk, 4 * H), jnp.bfloat16)],  # gates_x
    )

    out_pad = pl.pallas_call(
        lstm_pool_kernel,
        out_shape=jax.ShapeDtypeStruct((B_pad, F), jnp.float32),
        grid_spec=grid_spec,
        compiler_params=pltpu.CompilerParams(
            dimension_semantics=("parallel",),       # shard batch blocks across TCs
            vmem_limit_bytes=vmem_limit),
        cost_estimate=cost,
    )(seq_tm, seqt_tm, src_p, w_ih_a, w_ih_b, w_hh_t, b_g,
      fc1_wa, fc1_wb, fc1_b, fc2_w_t, fc2_b)

    return out_pad[:B], None


def lstm_pool_ref(src, seq, seq_t, params):
    """Plain-JAX f32 reference of the PyTorch forward, for a correctness check."""
    B = src.shape[0]
    F = params["fc2_w"].shape[0]
    seq_x = jnp.concatenate([seq, seq_t], axis=2)
    h = jnp.zeros((B, F), jnp.float32)
    c = jnp.zeros((B, F), jnp.float32)
    for t in range(seq_x.shape[1]):
        gates = (seq_x[:, t] @ params["w_ih"].T + params["b_ih"]
                 + h @ params["w_hh"].T + params["b_hh"])
        i = jax.nn.sigmoid(gates[:, 0 * F:1 * F])
        f = jax.nn.sigmoid(gates[:, 1 * F:2 * F])
        g = jnp.tanh(gates[:, 2 * F:3 * F])
        o = jax.nn.sigmoid(gates[:, 3 * F:4 * F])
        c = f * c + i * g
        h = o * jnp.tanh(c)
    x = jnp.concatenate([h, src], axis=1)
    h1 = jnp.maximum(x @ params["fc1_w"].T + params["fc1_b"], 0.0)
    return h1 @ params["fc2_w"].T + params["fc2_b"]


if __name__ == "__main__":
    B, L = 2, 8
    feat_dim, time_dim = 32, 32

    key = jax.random.PRNGKey(0)
    k_p, k_src, k_srct, k_seq, k_seqt = jax.random.split(key, 5)
    params = init_params(k_p, feat_dim, time_dim)

    src = jax.random.normal(k_src, (B, feat_dim), jnp.float32)
    src_t = jax.random.normal(k_srct, (B, 1), jnp.float32)        # unused by forward
    seq = jax.random.normal(k_seq, (B, L, feat_dim), jnp.float32)
    seq_t = jax.random.normal(k_seqt, (B, L, time_dim), jnp.float32)
    mask = jnp.zeros((B, L), jnp.float32)                         # unused by forward

    out, none_val = lstm_pool(src, src_t, seq, seq_t, mask, params)
    out = jax.block_until_ready(out)
    assert none_val is None
    assert out.shape == (B, feat_dim)

    ref = lstm_pool_ref(src, seq, seq_t, params)
    # bf16 is used intentionally on the MXU paths and the gate scratch; compare
    # against the f32 reference at a correspondingly relaxed tolerance.
    assert jnp.allclose(out, ref, rtol=2e-2, atol=2e-2), "mismatch vs. JAX reference"

    print("KERNEL_OK")
</pallas_src>

<mosaic_0001>
module attributes {stable_mosaic.version = 11 : i64} {
  func.func @lstm_pool_kernel(%arg0: i32, %arg1: memref<8x16x32xbf16, #tpu.memory_space<vmem>>, %arg2: memref<8x16x32xbf16, #tpu.memory_space<vmem>>, %arg3: memref<16x32xf32, #tpu.memory_space<vmem>>, %arg4: memref<32x128xbf16, #tpu.memory_space<vmem>>, %arg5: memref<32x128xbf16, #tpu.memory_space<vmem>>, %arg6: memref<32x128xbf16, #tpu.memory_space<vmem>>, %arg7: memref<1x128xf32, #tpu.memory_space<vmem>>, %arg8: memref<32x32xf32, #tpu.memory_space<vmem>>, %arg9: memref<32x32xf32, #tpu.memory_space<vmem>>, %arg10: memref<1x32xf32, #tpu.memory_space<vmem>>, %arg11: memref<32x32xf32, #tpu.memory_space<vmem>>, %arg12: memref<1x32xf32, #tpu.memory_space<vmem>>, %arg13: memref<16x32xf32, #tpu.memory_space<vmem>>, %arg14: memref<128x128xbf16, #tpu.memory_space<vmem>>) attributes {dimension_semantics = [#tpu.dimension_semantics<parallel>], iteration_bounds = array<i64: 1>, scalar_prefetch = 0 : i64, scratch_operands = 1 : i64, tpu.core_type = #tpu.core_type<tc>, window_params = [{transform_indices = @transform_0, window_bounds = array<i64: 8, 16, 32>}, {transform_indices = @transform_1, window_bounds = array<i64: 8, 16, 32>}, {transform_indices = @transform_2, window_bounds = array<i64: 16, 32>}, {pipeline_mode = #tpu.pipeline_mode<synchronous>, transform_indices = @transform_3, window_bounds = array<i64: 32, 128>}, {pipeline_mode = #tpu.pipeline_mode<synchronous>, transform_indices = @transform_4, window_bounds = array<i64: 32, 128>}, {pipeline_mode = #tpu.pipeline_mode<synchronous>, transform_indices = @transform_5, window_bounds = array<i64: 32, 128>}, {pipeline_mode = #tpu.pipeline_mode<synchronous>, transform_indices = @transform_6, window_bounds = array<i64: 1, 128>}, {pipeline_mode = #tpu.pipeline_mode<synchronous>, transform_indices = @transform_7, window_bounds = array<i64: 32, 32>}, {pipeline_mode = #tpu.pipeline_mode<synchronous>, transform_indices = @transform_8, window_bounds = array<i64: 32, 32>}, {pipeline_mode = #tpu.pipeline_mode<synchronous>, transform_indices = @transform_9, window_bounds = array<i64: 1, 32>}, {pipeline_mode = #tpu.pipeline_mode<synchronous>, transform_indices = @transform_10, window_bounds = array<i64: 32, 32>}, {pipeline_mode = #tpu.pipeline_mode<synchronous>, transform_indices = @transform_11, window_bounds = array<i64: 1, 32>}, {transform_indices = @transform_12, window_bounds = array<i64: 16, 32>}]} {
    %c0 = arith.constant 0 : index
    %c0_0 = arith.constant 0 : index
    %c0_1 = arith.constant 0 : index
    %0 = vector.load %arg1[%c0, %c0_0, %c0_1] : memref<8x16x32xbf16, #tpu.memory_space<vmem>>, vector<8x16x32xbf16>
    %1 = vector.shape_cast %0 : vector<8x16x32xbf16> to vector<128x32xbf16>
    %c0_2 = arith.constant 0 : index
    %c0_3 = arith.constant 0 : index
    %c0_4 = arith.constant 0 : index
    %2 = vector.load %arg2[%c0_2, %c0_3, %c0_4] : memref<8x16x32xbf16, #tpu.memory_space<vmem>>, vector<8x16x32xbf16>
    %3 = vector.shape_cast %2 : vector<8x16x32xbf16> to vector<128x32xbf16>
    %c0_5 = arith.constant 0 : index
    %c0_6 = arith.constant 0 : index
    %4 = vector.load %arg4[%c0_5, %c0_6] : memref<32x128xbf16, #tpu.memory_space<vmem>>, vector<32x128xbf16>
    %cst = arith.constant dense<0.000000e+00> : vector<128x128xf32>
    %5 = tpu.matmul %1, %4, %cst {dimension_numbers = #tpu.dot_dimension_numbers<[1], [0], [0], [1], [0, 0, 1, 1], [], []>} : vector<128x32xbf16>, vector<32x128xbf16>, vector<128x128xf32> -> vector<128x128xf32>
    %c0_7 = arith.constant 0 : index
    %c0_8 = arith.constant 0 : index
    %6 = vector.load %arg5[%c0_7, %c0_8] : memref<32x128xbf16, #tpu.memory_space<vmem>>, vector<32x128xbf16>
    %cst_9 = arith.constant dense<0.000000e+00> : vector<128x128xf32>
    %7 = tpu.matmul %3, %6, %cst_9 {dimension_numbers = #tpu.dot_dimension_numbers<[1], [0], [0], [1], [0, 0, 1, 1], [], []>} : vector<128x32xbf16>, vector<32x128xbf16>, vector<128x128xf32> -> vector<128x128xf32>
    %8 = arith.addf %5, %7 : vector<128x128xf32>
    %c0_10 = arith.constant 0 : index
    %c0_11 = arith.constant 0 : index
    %9 = vector.load %arg7[%c0_10, %c0_11] : memref<1x128xf32, #tpu.memory_space<vmem>>, vector<1x128xf32>
    %10 = vector.broadcast %9 : vector<1x128xf32> to vector<128x128xf32>
    %11 = arith.addf %8, %10 : vector<128x128xf32>
    %12 = arith.truncf %11 : vector<128x128xf32> to vector<128x128xbf16>
    %c0_12 = arith.constant 0 : index
    %c0_13 = arith.constant 0 : index
    %13 = vector.load %arg14[%c0_12, %c0_13] : memref<128x128xbf16, #tpu.memory_space<vmem>>, vector<128x128xbf16>
    tpu.vector_store %arg14[%c0_12, %c0_13], %12 {strides = array<i32>} : memref<128x128xbf16, #tpu.memory_space<vmem>>, vector<128x128xbf16>,
    %cst_14 = arith.constant 0.000000e+00 : f32
    %14 = vector.broadcast %cst_14 : f32 to vector<16x32xf32>
    %cst_15 = arith.constant 0.000000e+00 : f32
    %15 = vector.broadcast %cst_15 : f32 to vector<16x32xf32>
    %c0_i32 = arith.constant 0 : i32
    %c16_i32 = arith.constant 16 : i32
    %16 = arith.muli %c0_i32, %c16_i32 : i32
    %17 = tpu.assume_multiple %16, 16 : i32
    %18 = arith.index_cast %17 : i32 to index
    %c0_16 = arith.constant 0 : index
    %19 = vector.load %arg14[%18, %c0_16] : memref<128x128xbf16, #tpu.memory_space<vmem>>, vector<16x128xbf16>
    %20 = arith.extf %19 : vector<16x128xbf16> to vector<16x128xf32>
    %21 = arith.truncf %14 : vector<16x32xf32> to vector<16x32xbf16>
    %c0_17 = arith.constant 0 : index
    %c0_18 = arith.constant 0 : index
    %22 = vector.load %arg6[%c0_17, %c0_18] : memref<32x128xbf16, #tpu.memory_space<vmem>>, vector<32x128xbf16>
    %cst_19 = arith.constant dense<0.000000e+00> : vector<16x128xf32>
    %23 = tpu.matmul %21, %22, %cst_19 {dimension_numbers = #tpu.dot_dimension_numbers<[1], [0], [0], [1], [0, 0, 1, 1], [], []>} : vector<16x32xbf16>, vector<32x128xbf16>, vector<16x128xf32> -> vector<16x128xf32>
    %24 = arith.addf %20, %23 : vector<16x128xf32>
    %25 = arith.negf %24 : vector<16x128xf32>
    %26 = math.exp %25 : vector<16x128xf32>
    %cst_20 = arith.constant 1.000000e+00 : f32
    %27 = vector.broadcast %cst_20 : f32 to vector<16x128xf32>
    %28 = arith.addf %27, %26 : vector<16x128xf32>
    %29 = arith.divf %27, %28 : vector<16x128xf32>
    %30 = vector.extract_strided_slice %29 {offsets = [0, 0], sizes = [16, 32], strides = [1, 1]} : vector<16x128xf32> to vector<16x32xf32>
    %31 = vector.extract_strided_slice %29 {offsets = [0, 32], sizes = [16, 32], strides = [1, 1]} : vector<16x128xf32> to vector<16x32xf32>
    %32 = vector.extract_strided_slice %29 {offsets = [0, 64], sizes = [16, 32], strides = [1, 1]} : vector<16x128xf32> to vector<16x32xf32>
    %cst_21 = arith.constant 2.000000e+00 : f32
    %33 = vector.broadcast %cst_21 : f32 to vector<16x32xf32>
    %34 = arith.mulf %33, %32 : vector<16x32xf32>
    %cst_22 = arith.constant 1.000000e+00 : f32
    %35 = vector.broadcast %cst_22 : f32 to vector<16x32xf32>
    %36 = arith.subf %34, %35 : vector<16x32xf32>
    %37 = vector.extract_strided_slice %29 {offsets = [0, 96], sizes = [16, 32], strides = [1, 1]} : vector<16x128xf32> to vector<16x32xf32>
    %38 = arith.mulf %31, %15 : vector<16x32xf32>
    %39 = arith.mulf %30, %36 : vector<16x32xf32>
    %40 = arith.addf %38, %39 : vector<16x32xf32>
    %41 = math.tanh %40 : vector<16x32xf32>
    %42 = arith.mulf %37, %41 : vector<16x32xf32>
    %c1_i32 = arith.constant 1 : i32
    %c16_i32_23 = arith.constant 16 : i32
    %43 = arith.muli %c1_i32, %c16_i32_23 : i32
    %44 = tpu.assume_multiple %43, 16 : i32
    %45 = arith.index_cast %44 : i32 to index
    %c0_24 = arith.constant 0 : index
    %46 = vector.load %arg14[%45, %c0_24] : memref<128x128xbf16, #tpu.memory_space<vmem>>, vector<16x128xbf16>
    %47 = arith.extf %46 : vector<16x128xbf16> to vector<16x128xf32>
    %48 = arith.truncf %42 : vector<16x32xf32> to vector<16x32xbf16>
    %c0_25 = arith.constant 0 : index
    %c0_26 = arith.constant 0 : index
    %49 = vector.load %arg6[%c0_25, %c0_26] : memref<32x128xbf16, #tpu.memory_space<vmem>>, vector<32x128xbf16>
    %cst_27 = arith.constant dense<0.000000e+00> : vector<16x128xf32>
    %50 = tpu.matmul %48, %49, %cst_27 {dimension_numbers = #tpu.dot_dimension_numbers<[1], [0], [0], [1], [0, 0, 1, 1], [], []>} : vector<16x32xbf16>, vector<32x128xbf16>, vector<16x128xf32> -> vector<16x128xf32>
    %51 = arith.addf %47, %50 : vector<16x128xf32>
    %52 = arith.negf %51 : vector<16x128xf32>
    %53 = math.exp %52 : vector<16x128xf32>
    %cst_28 = arith.constant 1.000000e+00 : f32
    %54 = vector.broadcast %cst_28 : f32 to vector<16x128xf32>
    %55 = arith.addf %54, %53 : vector<16x128xf32>
    %56 = arith.divf %54, %55 : vector<16x128xf32>
    %57 = vector.extract_strided_slice %56 {offsets = [0, 0], sizes = [16, 32], strides = [1, 1]} : vector<16x128xf32> to vector<16x32xf32>
    %58 = vector.extract_strided_slice %56 {offsets = [0, 32], sizes = [16, 32], strides = [1, 1]} : vector<16x128xf32> to vector<16x32xf32>
    %59 = vector.extract_strided_slice %56 {offsets = [0, 64], sizes = [16, 32], strides = [1, 1]} : vector<16x128xf32> to vector<16x32xf32>
    %cst_29 = arith.constant 2.000000e+00 : f32
    %60 = vector.broadcast %cst_29 : f32 to vector<16x32xf32>
    %61 = arith.mulf %60, %59 : vector<16x32xf32>
    %cst_30 = arith.constant 1.000000e+00 : f32
    %62 = vector.broadcast %cst_30 : f32 to vector<16x32xf32>
    %63 = arith.subf %61, %62 : vector<16x32xf32>
    %64 = vector.extract_strided_slice %56 {offsets = [0, 96], sizes = [16, 32], strides = [1, 1]} : vector<16x128xf32> to vector<16x32xf32>
    %65 = arith.mulf %58, %40 : vector<16x32xf32>
    %66 = arith.mulf %57, %63 : vector<16x32xf32>
    %67 = arith.addf %65, %66 : vector<16x32xf32>
    %68 = math.tanh %67 : vector<16x32xf32>
    %69 = arith.mulf %64, %68 : vector<16x32xf32>
    %c2_i32 = arith.constant 2 : i32
    %c16_i32_31 = arith.constant 16 : i32
    %70 = arith.muli %c2_i32, %c16_i32_31 : i32
    %71 = tpu.assume_multiple %70, 16 : i32
    %72 = arith.index_cast %71 : i32 to index
    %c0_32 = arith.constant 0 : index
    %73 = vector.load %arg14[%72, %c0_32] : memref<128x128xbf16, #tpu.memory_space<vmem>>, vector<16x128xbf16>
    %74 = arith.extf %73 : vector<16x128xbf16> to vector<16x128xf32>
    %75 = arith.truncf %69 : vector<16x32xf32> to vector<16x32xbf16>
    %c0_33 = arith.constant 0 : index
    %c0_34 = arith.constant 0 : index
    %76 = vector.load %arg6[%c0_33, %c0_34] : memref<32x128xbf16, #tpu.memory_space<vmem>>, vector<32x128xbf16>
    %cst_35 = arith.constant dense<0.000000e+00> : vector<16x128xf32>
    %77 = tpu.matmul %75, %76, %cst_35 {dimension_numbers = #tpu.dot_dimension_numbers<[1], [0], [0], [1], [0, 0, 1, 1], [], []>} : vector<16x32xbf16>, vector<32x128xbf16>, vector<16x128xf32> -> vector<16x128xf32>
    %78 = arith.addf %74, %77 : vector<16x128xf32>
    %79 = arith.negf %78 : vector<16x128xf32>
    %80 = math.exp %79 : vector<16x128xf32>
    %cst_36 = arith.constant 1.000000e+00 : f32
    %81 = vector.broadcast %cst_36 : f32 to vector<16x128xf32>
    %82 = arith.addf %81, %80 : vector<16x128xf32>
    %83 = arith.divf %81, %82 : vector<16x128xf32>
    %84 = vector.extract_strided_slice %83 {offsets = [0, 0], sizes = [16, 32], strides = [1, 1]} : vector<16x128xf32> to vector<16x32xf32>
    %85 = vector.extract_strided_slice %83 {offsets = [0, 32], sizes = [16, 32], strides = [1, 1]} : vector<16x128xf32> to vector<16x32xf32>
    %86 = vector.extract_strided_slice %83 {offsets = [0, 64], sizes = [16, 32], strides = [1, 1]} : vector<16x128xf32> to vector<16x32xf32>
    %cst_37 = arith.constant 2.000000e+00 : f32
    %87 = vector.broadcast %cst_37 : f32 to vector<16x32xf32>
    %88 = arith.mulf %87, %86 : vector<16x32xf32>
    %cst_38 = arith.constant 1.000000e+00 : f32
    %89 = vector.broadcast %cst_38 : f32 to vector<16x32xf32>
    %90 = arith.subf %88, %89 : vector<16x32xf32>
    %91 = vector.extract_strided_slice %83 {offsets = [0, 96], sizes = [16, 32], strides = [1, 1]} : vector<16x128xf32> to vector<16x32xf32>
    %92 = arith.mulf %85, %67 : vector<16x32xf32>
    %93 = arith.mulf %84, %90 : vector<16x32xf32>
    %94 = arith.addf %92, %93 : vector<16x32xf32>
    %95 = math.tanh %94 : vector<16x32xf32>
    %96 = arith.mulf %91, %95 : vector<16x32xf32>
    %c3_i32 = arith.constant 3 : i32
    %c16_i32_39 = arith.constant 16 : i32
    %97 = arith.muli %c3_i32, %c16_i32_39 : i32
    %98 = tpu.assume_multiple %97, 16 : i32
    %99 = arith.index_cast %98 : i32 to index
    %c0_40 = arith.constant 0 : index
    %100 = vector.load %arg14[%99, %c0_40] : memref<128x128xbf16, #tpu.memory_space<vmem>>, vector<16x128xbf16>
    %101 = arith.extf %100 : vector<16x128xbf16> to vector<16x128xf32>
    %102 = arith.truncf %96 : vector<16x32xf32> to vector<16x32xbf16>
    %c0_41 = arith.constant 0 : index
    %c0_42 = arith.constant 0 : index
    %103 = vector.load %arg6[%c0_41, %c0_42] : memref<32x128xbf16, #tpu.memory_space<vmem>>, vector<32x128xbf16>
    %cst_43 = arith.constant dense<0.000000e+00> : vector<16x128xf32>
    %104 = tpu.matmul %102, %103, %cst_43 {dimension_numbers = #tpu.dot_dimension_numbers<[1], [0], [0], [1], [0, 0, 1, 1], [], []>} : vector<16x32xbf16>, vector<32x128xbf16>, vector<16x128xf32> -> vector<16x128xf32>
    %105 = arith.addf %101, %104 : vector<16x128xf32>
    %106 = arith.negf %105 : vector<16x128xf32>
    %107 = math.exp %106 : vector<16x128xf32>
    %cst_44 = arith.constant 1.000000e+00 : f32
    %108 = vector.broadcast %cst_44 : f32 to vector<16x128xf32>
    %109 = arith.addf %108, %107 : vector<16x128xf32>
    %110 = arith.divf %108, %109 : vector<16x128xf32>
    %111 = vector.extract_strided_slice %110 {offsets = [0, 0], sizes = [16, 32], strides = [1, 1]} : vector<16x128xf32> to vector<16x32xf32>
    %112 = vector.extract_strided_slice %110 {offsets = [0, 32], sizes = [16, 32], strides = [1, 1]} : vector<16x128xf32> to vector<16x32xf32>
    %113 = vector.extract_strided_slice %110 {offsets = [0, 64], sizes = [16, 32], strides = [1, 1]} : vector<16x128xf32> to vector<16x32xf32>
    %cst_45 = arith.constant 2.000000e+00 : f32
    %114 = vector.broadcast %cst_45 : f32 to vector<16x32xf32>
    %115 = arith.mulf %114, %113 : vector<16x32xf32>
    %cst_46 = arith.constant 1.000000e+00 : f32
    %116 = vector.broadcast %cst_46 : f32 to vector<16x32xf32>
    %117 = arith.subf %115, %116 : vector<16x32xf32>
    %118 = vector.extract_strided_slice %110 {offsets = [0, 96], sizes = [16, 32], strides = [1, 1]} : vector<16x128xf32> to vector<16x32xf32>
    %119 = arith.mulf %112, %94 : vector<16x32xf32>
    %120 = arith.mulf %111, %117 : vector<16x32xf32>
    %121 = arith.addf %119, %120 : vector<16x32xf32>
    %122 = math.tanh %121 : vector<16x32xf32>
    %123 = arith.mulf %118, %122 : vector<16x32xf32>
    %c4_i32 = arith.constant 4 : i32
    %c16_i32_47 = arith.constant 16 : i32
    %124 = arith.muli %c4_i32, %c16_i32_47 : i32
    %125 = tpu.assume_multiple %124, 16 : i32
    %126 = arith.index_cast %125 : i32 to index
    %c0_48 = arith.constant 0 : index
    %127 = vector.load %arg14[%126, %c0_48] : memref<128x128xbf16, #tpu.memory_space<vmem>>, vector<16x128xbf16>
    %128 = arith.extf %127 : vector<16x128xbf16> to vector<16x128xf32>
    %129 = arith.truncf %123 : vector<16x32xf32> to vector<16x32xbf16>
    %c0_49 = arith.constant 0 : index
    %c0_50 = arith.constant 0 : index
    %130 = vector.load %arg6[%c0_49, %c0_50] : memref<32x128xbf16, #tpu.memory_space<vmem>>, vector<32x128xbf16>
    %cst_51 = arith.constant dense<0.000000e+00> : vector<16x128xf32>
    %131 = tpu.matmul %129, %130, %cst_51 {dimension_numbers = #tpu.dot_dimension_numbers<[1], [0], [0], [1], [0, 0, 1, 1], [], []>} : vector<16x32xbf16>, vector<32x128xbf16>, vector<16x128xf32> -> vector<16x128xf32>
    %132 = arith.addf %128, %131 : vector<16x128xf32>
    %133 = arith.negf %132 : vector<16x128xf32>
    %134 = math.exp %133 : vector<16x128xf32>
    %cst_52 = arith.constant 1.000000e+00 : f32
    %135 = vector.broadcast %cst_52 : f32 to vector<16x128xf32>
    %136 = arith.addf %135, %134 : vector<16x128xf32>
    %137 = arith.divf %135, %136 : vector<16x128xf32>
    %138 = vector.extract_strided_slice %137 {offsets = [0, 0], sizes = [16, 32], strides = [1, 1]} : vector<16x128xf32> to vector<16x32xf32>
    %139 = vector.extract_strided_slice %137 {offsets = [0, 32], sizes = [16, 32], strides = [1, 1]} : vector<16x128xf32> to vector<16x32xf32>
    %140 = vector.extract_strided_slice %137 {offsets = [0, 64], sizes = [16, 32], strides = [1, 1]} : vector<16x128xf32> to vector<16x32xf32>
    %cst_53 = arith.constant 2.000000e+00 : f32
    %141 = vector.broadcast %cst_53 : f32 to vector<16x32xf32>
    %142 = arith.mulf %141, %140 : vector<16x32xf32>
    %cst_54 = arith.constant 1.000000e+00 : f32
    %143 = vector.broadcast %cst_54 : f32 to vector<16x32xf32>
    %144 = arith.subf %142, %143 : vector<16x32xf32>
    %145 = vector.extract_strided_slice %137 {offsets = [0, 96], sizes = [16, 32], strides = [1, 1]} : vector<16x128xf32> to vector<16x32xf32>
    %146 = arith.mulf %139, %121 : vector<16x32xf32>
    %147 = arith.mulf %138, %144 : vector<16x32xf32>
    %148 = arith.addf %146, %147 : vector<16x32xf32>
    %149 = math.tanh %148 : vector<16x32xf32>
    %150 = arith.mulf %145, %149 : vector<16x32xf32>
    %c5_i32 = arith.constant 5 : i32
    %c16_i32_55 = arith.constant 16 : i32
    %151 = arith.muli %c5_i32, %c16_i32_55 : i32
    %152 = tpu.assume_multiple %151, 16 : i32
    %153 = arith.index_cast %152 : i32 to index
    %c0_56 = arith.constant 0 : index
    %154 = vector.load %arg14[%153, %c0_56] : memref<128x128xbf16, #tpu.memory_space<vmem>>, vector<16x128xbf16>
    %155 = arith.extf %154 : vector<16x128xbf16> to vector<16x128xf32>
    %156 = arith.truncf %150 : vector<16x32xf32> to vector<16x32xbf16>
    %c0_57 = arith.constant 0 : index
    %c0_58 = arith.constant 0 : index
    %157 = vector.load %arg6[%c0_57, %c0_58] : memref<32x128xbf16, #tpu.memory_space<vmem>>, vector<32x128xbf16>
    %cst_59 = arith.constant dense<0.000000e+00> : vector<16x128xf32>
    %158 = tpu.matmul %156, %157, %cst_59 {dimension_numbers = #tpu.dot_dimension_numbers<[1], [0], [0], [1], [0, 0, 1, 1], [], []>} : vector<16x32xbf16>, vector<32x128xbf16>, vector<16x128xf32> -> vector<16x128xf32>
    %159 = arith.addf %155, %158 : vector<16x128xf32>
    %160 = arith.negf %159 : vector<16x128xf32>
    %161 = math.exp %160 : vector<16x128xf32>
    %cst_60 = arith.constant 1.000000e+00 : f32
    %162 = vector.broadcast %cst_60 : f32 to vector<16x128xf32>
    %163 = arith.addf %162, %161 : vector<16x128xf32>
    %164 = arith.divf %162, %163 : vector<16x128xf32>
    %165 = vector.extract_strided_slice %164 {offsets = [0, 0], sizes = [16, 32], strides = [1, 1]} : vector<16x128xf32> to vector<16x32xf32>
    %166 = vector.extract_strided_slice %164 {offsets = [0, 32], sizes = [16, 32], strides = [1, 1]} : vector<16x128xf32> to vector<16x32xf32>
    %167 = vector.extract_strided_slice %164 {offsets = [0, 64], sizes = [16, 32], strides = [1, 1]} : vector<16x128xf32> to vector<16x32xf32>
    %cst_61 = arith.constant 2.000000e+00 : f32
    %168 = vector.broadcast %cst_61 : f32 to vector<16x32xf32>
    %169 = arith.mulf %168, %167 : vector<16x32xf32>
    %cst_62 = arith.constant 1.000000e+00 : f32
    %170 = vector.broadcast %cst_62 : f32 to vector<16x32xf32>
    %171 = arith.subf %169, %170 : vector<16x32xf32>
    %172 = vector.extract_strided_slice %164 {offsets = [0, 96], sizes = [16, 32], strides = [1, 1]} : vector<16x128xf32> to vector<16x32xf32>
    %173 = arith.mulf %166, %148 : vector<16x32xf32>
    %174 = arith.mulf %165, %171 : vector<16x32xf32>
    %175 = arith.addf %173, %174 : vector<16x32xf32>
    %176 = math.tanh %175 : vector<16x32xf32>
    %177 = arith.mulf %172, %176 : vector<16x32xf32>
    %c6_i32 = arith.constant 6 : i32
    %c16_i32_63 = arith.constant 16 : i32
    %178 = arith.muli %c6_i32, %c16_i32_63 : i32
    %179 = tpu.assume_multiple %178, 16 : i32
    %180 = arith.index_cast %179 : i32 to index
    %c0_64 = arith.constant 0 : index
    %181 = vector.load %arg14[%180, %c0_64] : memref<128x128xbf16, #tpu.memory_space<vmem>>, vector<16x128xbf16>
    %182 = arith.extf %181 : vector<16x128xbf16> to vector<16x128xf32>
    %183 = arith.truncf %177 : vector<16x32xf32> to vector<16x32xbf16>
    %c0_65 = arith.constant 0 : index
    %c0_66 = arith.constant 0 : index
    %184 = vector.load %arg6[%c0_65, %c0_66] : memref<32x128xbf16, #tpu.memory_space<vmem>>, vector<32x128xbf16>
    %cst_67 = arith.constant dense<0.000000e+00> : vector<16x128xf32>
    %185 = tpu.matmul %183, %184, %cst_67 {dimension_numbers = #tpu.dot_dimension_numbers<[1], [0], [0], [1], [0, 0, 1, 1], [], []>} : vector<16x32xbf16>, vector<32x128xbf16>, vector<16x128xf32> -> vector<16x128xf32>
    %186 = arith.addf %182, %185 : vector<16x128xf32>
    %187 = arith.negf %186 : vector<16x128xf32>
    %188 = math.exp %187 : vector<16x128xf32>
    %cst_68 = arith.constant 1.000000e+00 : f32
    %189 = vector.broadcast %cst_68 : f32 to vector<16x128xf32>
    %190 = arith.addf %189, %188 : vector<16x128xf32>
    %191 = arith.divf %189, %190 : vector<16x128xf32>
    %192 = vector.extract_strided_slice %191 {offsets = [0, 0], sizes = [16, 32], strides = [1, 1]} : vector<16x128xf32> to vector<16x32xf32>
    %193 = vector.extract_strided_slice %191 {offsets = [0, 32], sizes = [16, 32], strides = [1, 1]} : vector<16x128xf32> to vector<16x32xf32>
    %194 = vector.extract_strided_slice %191 {offsets = [0, 64], sizes = [16, 32], strides = [1, 1]} : vector<16x128xf32> to vector<16x32xf32>
    %cst_69 = arith.constant 2.000000e+00 : f32
    %195 = vector.broadcast %cst_69 : f32 to vector<16x32xf32>
    %196 = arith.mulf %195, %194 : vector<16x32xf32>
    %cst_70 = arith.constant 1.000000e+00 : f32
    %197 = vector.broadcast %cst_70 : f32 to vector<16x32xf32>
    %198 = arith.subf %196, %197 : vector<16x32xf32>
    %199 = vector.extract_strided_slice %191 {offsets = [0, 96], sizes = [16, 32], strides = [1, 1]} : vector<16x128xf32> to vector<16x32xf32>
    %200 = arith.mulf %193, %175 : vector<16x32xf32>
    %201 = arith.mulf %192, %198 : vector<16x32xf32>
    %202 = arith.addf %200, %201 : vector<16x32xf32>
    %203 = math.tanh %202 : vector<16x32xf32>
    %204 = arith.mulf %199, %203 : vector<16x32xf32>
    %c7_i32 = arith.constant 7 : i32
    %c16_i32_71 = arith.constant 16 : i32
    %205 = arith.muli %c7_i32, %c16_i32_71 : i32
    %206 = tpu.assume_multiple %205, 16 : i32
    %207 = arith.index_cast %206 : i32 to index
    %c0_72 = arith.constant 0 : index
    %208 = vector.load %arg14[%207, %c0_72] : memref<128x128xbf16, #tpu.memory_space<vmem>>, vector<16x128xbf16>
    %209 = arith.extf %208 : vector<16x128xbf16> to vector<16x128xf32>
    %210 = arith.truncf %204 : vector<16x32xf32> to vector<16x32xbf16>
    %c0_73 = arith.constant 0 : index
    %c0_74 = arith.constant 0 : index
    %211 = vector.load %arg6[%c0_73, %c0_74] : memref<32x128xbf16, #tpu.memory_space<vmem>>, vector<32x128xbf16>
    %cst_75 = arith.constant dense<0.000000e+00> : vector<16x128xf32>
    %212 = tpu.matmul %210, %211, %cst_75 {dimension_numbers = #tpu.dot_dimension_numbers<[1], [0], [0], [1], [0, 0, 1, 1], [], []>} : vector<16x32xbf16>, vector<32x128xbf16>, vector<16x128xf32> -> vector<16x128xf32>
    %213 = arith.addf %209, %212 : vector<16x128xf32>
    %214 = arith.negf %213 : vector<16x128xf32>
    %215 = math.exp %214 : vector<16x128xf32>
    %cst_76 = arith.constant 1.000000e+00 : f32
    %216 = vector.broadcast %cst_76 : f32 to vector<16x128xf32>
    %217 = arith.addf %216, %215 : vector<16x128xf32>
    %218 = arith.divf %216, %217 : vector<16x128xf32>
    %219 = vector.extract_strided_slice %218 {offsets = [0, 0], sizes = [16, 32], strides = [1, 1]} : vector<16x128xf32> to vector<16x32xf32>
    %220 = vector.extract_strided_slice %218 {offsets = [0, 32], sizes = [16, 32], strides = [1, 1]} : vector<16x128xf32> to vector<16x32xf32>
    %221 = vector.extract_strided_slice %218 {offsets = [0, 64], sizes = [16, 32], strides = [1, 1]} : vector<16x128xf32> to vector<16x32xf32>
    %cst_77 = arith.constant 2.000000e+00 : f32
    %222 = vector.broadcast %cst_77 : f32 to vector<16x32xf32>
    %223 = arith.mulf %222, %221 : vector<16x32xf32>
    %cst_78 = arith.constant 1.000000e+00 : f32
    %224 = vector.broadcast %cst_78 : f32 to vector<16x32xf32>
    %225 = arith.subf %223, %224 : vector<16x32xf32>
    %226 = vector.extract_strided_slice %218 {offsets = [0, 96], sizes = [16, 32], strides = [1, 1]} : vector<16x128xf32> to vector<16x32xf32>
    %227 = arith.mulf %220, %202 : vector<16x32xf32>
    %228 = arith.mulf %219, %225 : vector<16x32xf32>
    %229 = arith.addf %227, %228 : vector<16x32xf32>
    %230 = math.tanh %229 : vector<16x32xf32>
    %231 = arith.mulf %226, %230 : vector<16x32xf32>
    %c8_i32 = arith.constant 8 : i32
    %c0_79 = arith.constant 0 : index
    %c0_80 = arith.constant 0 : index
    %232 = vector.load %arg8[%c0_79, %c0_80] : memref<32x32xf32, #tpu.memory_space<vmem>>, vector<32x32xf32>
    %cst_81 = arith.constant dense<0.000000e+00> : vector<16x32xf32>
    %233 = tpu.matmul %231, %232, %cst_81 {dimension_numbers = #tpu.dot_dimension_numbers<[1], [0], [0], [1], [0, 0, 1, 1], [], []>} : vector<16x32xf32>, vector<32x32xf32>, vector<16x32xf32> -> vector<16x32xf32>
    %c0_82 = arith.constant 0 : index
    %c0_83 = arith.constant 0 : index
    %234 = vector.load %arg3[%c0_82, %c0_83] : memref<16x32xf32, #tpu.memory_space<vmem>>, vector<16x32xf32>
    %c0_84 = arith.constant 0 : index
    %c0_85 = arith.constant 0 : index
    %235 = vector.load %arg9[%c0_84, %c0_85] : memref<32x32xf32, #tpu.memory_space<vmem>>, vector<32x32xf32>
    %cst_86 = arith.constant dense<0.000000e+00> : vector<16x32xf32>
    %236 = tpu.matmul %234, %235, %cst_86 {dimension_numbers = #tpu.dot_dimension_numbers<[1], [0], [0], [1], [0, 0, 1, 1], [], []>} : vector<16x32xf32>, vector<32x32xf32>, vector<16x32xf32> -> vector<16x32xf32>
    %237 = arith.addf %233, %236 : vector<16x32xf32>
    %c0_87 = arith.constant 0 : index
    %c0_88 = arith.constant 0 : index
    %238 = vector.load %arg10[%c0_87, %c0_88] : memref<1x32xf32, #tpu.memory_space<vmem>>, vector<1x32xf32>
    %239 = vector.broadcast %238 : vector<1x32xf32> to vector<16x32xf32>
    %240 = arith.addf %237, %239 : vector<16x32xf32>
    %cst_89 = arith.constant 0.000000e+00 : f32
    %241 = vector.broadcast %cst_89 : f32 to vector<16x32xf32>
    %242 = arith.maximumf %240, %241 : vector<16x32xf32>
    %c0_90 = arith.constant 0 : index
    %c0_91 = arith.constant 0 : index
    %243 = vector.load %arg11[%c0_90, %c0_91] : memref<32x32xf32, #tpu.memory_space<vmem>>, vector<32x32xf32>
    %cst_92 = arith.constant dense<0.000000e+00> : vector<16x32xf32>
    %244 = tpu.matmul %242, %243, %cst_92 {dimension_numbers = #tpu.dot_dimension_numbers<[1], [0], [0], [1], [0, 0, 1, 1], [], []>} : vector<16x32xf32>, vector<32x32xf32>, vector<16x32xf32> -> vector<16x32xf32>
    %c0_93 = arith.constant 0 : index
    %c0_94 = arith.constant 0 : index
    %245 = vector.load %arg12[%c0_93, %c0_94] : memref<1x32xf32, #tpu.memory_space<vmem>>, vector<1x32xf32>
    %246 = vector.broadcast %245 : vector<1x32xf32> to vector<16x32xf32>
    %247 = arith.addf %244, %246 : vector<16x32xf32>
    %c0_95 = arith.constant 0 : index
    %c0_96 = arith.constant 0 : index
    %248 = vector.load %arg13[%c0_95, %c0_96] : memref<16x32xf32, #tpu.memory_space<vmem>>, vector<16x32xf32>
    tpu.vector_store %arg13[%c0_95, %c0_96], %247 {strides = array<i32>} : memref<16x32xf32, #tpu.memory_space<vmem>>, vector<16x32xf32>,
    return
  }
  func.func @transform_0(%arg0: i32) -> (i32, i32, i32) {
    %c0_i32 = arith.constant 0 : i32
    %c0_i32_0 = arith.constant 0 : i32
    %c0_i32_1 = arith.constant 0 : i32
    return %c0_i32, %arg0, %c0_i32_0 : i32, i32, i32
  }
  func.func @transform_1(%arg0: i32) -> (i32, i32, i32) {
    %c0_i32 = arith.constant 0 : i32
    %c0_i32_0 = arith.constant 0 : i32
    %c0_i32_1 = arith.constant 0 : i32
    return %c0_i32, %arg0, %c0_i32_0 : i32, i32, i32
  }
  func.func @transform_2(%arg0: i32) -> (i32, i32) {
    %c0_i32 = arith.constant 0 : i32
    %c0_i32_0 = arith.constant 0 : i32
    return %arg0, %c0_i32 : i32, i32
  }
  func.func @transform_3(%arg0: i32) -> (i32, i32) {
    %c0_i32 = arith.constant 0 : i32
    %c0_i32_0 = arith.constant 0 : i32
    %c0_i32_1 = arith.constant 0 : i32
    return %c0_i32, %c0_i32_0 : i32, i32
  }
  func.func @transform_4(%arg0: i32) -> (i32, i32) {
    %c0_i32 = arith.constant 0 : i32
    %c0_i32_0 = arith.constant 0 : i32
    %c0_i32_1 = arith.constant 0 : i32
    return %c0_i32, %c0_i32_0 : i32, i32
  }
  func.func @transform_5(%arg0: i32) -> (i32, i32) {
    %c0_i32 = arith.constant 0 : i32
    %c0_i32_0 = arith.constant 0 : i32
    %c0_i32_1 = arith.constant 0 : i32
    return %c0_i32, %c0_i32_0 : i32, i32
  }
  func.func @transform_6(%arg0: i32) -> (i32, i32) {
    %c0_i32 = arith.constant 0 : i32
    %c0_i32_0 = arith.constant 0 : i32
    %c0_i32_1 = arith.constant 0 : i32
    return %c0_i32, %c0_i32_0 : i32, i32
  }
  func.func @transform_7(%arg0: i32) -> (i32, i32) {
    %c0_i32 = arith.constant 0 : i32
    %c0_i32_0 = arith.constant 0 : i32
    %c0_i32_1 = arith.constant 0 : i32
    return %c0_i32, %c0_i32_0 : i32, i32
  }
  func.func @transform_8(%arg0: i32) -> (i32, i32) {
    %c0_i32 = arith.constant 0 : i32
    %c0_i32_0 = arith.constant 0 : i32
    %c0_i32_1 = arith.constant 0 : i32
    return %c0_i32, %c0_i32_0 : i32, i32
  }
  func.func @transform_9(%arg0: i32) -> (i32, i32) {
    %c0_i32 = arith.constant 0 : i32
    %c0_i32_0 = arith.constant 0 : i32
    %c0_i32_1 = arith.constant 0 : i32
    return %c0_i32, %c0_i32_0 : i32, i32
  }
  func.func @transform_10(%arg0: i32) -> (i32, i32) {
    %c0_i32 = arith.constant 0 : i32
    %c0_i32_0 = arith.constant 0 : i32
    %c0_i32_1 = arith.constant 0 : i32
    return %c0_i32, %c0_i32_0 : i32, i32
  }
  func.func @transform_11(%arg0: i32) -> (i32, i32) {
    %c0_i32 = arith.constant 0 : i32
    %c0_i32_0 = arith.constant 0 : i32
    %c0_i32_1 = arith.constant 0 : i32
    return %c0_i32, %c0_i32_0 : i32, i32
  }
  func.func @transform_12(%arg0: i32) -> (i32, i32) {
    %c0_i32 = arith.constant 0 : i32
    %c0_i32_0 = arith.constant 0 : i32
    return %arg0, %c0_i32 : i32, i32
  }
}

</mosaic_0001>

<bundles_post_ra>
// kernel: tpu_custom_call.1
= control target key start
LH: loop header
LB: loop body
LE: loop exit
PB: predicated region body
PF: predicated region fallthrough
CT: control target
= control target key end

     0   :  { %17 = vsyncpa [#allocation4], 0  ;;  %s2470_s0 = inlined_call_operand.hbm [shape: bf16[8,16,32], index: 0, kind: input, shape index: {}]   ;;  %s2471_s1 = inlined_call_operand.hbm [shape: bf16[8,16,32], index: 1, kind: input, shape index: {}]   ;;  %s2472_s2 = inlined_call_operand.hbm [shape: f32[16,32], index: 2, kind: input, shape index: {}]   ;;  %s2473_s3 = inlined_call_operand.hbm [shape: bf16[32,128], index: 3, kind: input, shape index: {}]   ;;  %s2474_s4 = inlined_call_operand.hbm [shape: bf16[32,128], index: 4, kind: input, shape index: {}]   ;;  %s2475_s5 = inlined_call_operand.hbm [shape: bf16[32,128], index: 5, kind: input, shape index: {}]   ;;  %s2476_s6 = inlined_call_operand.vmem [shape: f32[1,128], index: 6, kind: input, shape index: {}]   ;;  %s2477_s7 = inlined_call_operand.hbm [shape: f32[32,32], index: 7, kind: input, shape index: {}]   ;;  %s2478_s8 = inlined_call_operand.hbm [shape: f32[32,32], index: 8, kind: input, shape index: {}]   ;;  %s2479_s9 = inlined_call_operand.vmem [shape: f32[1,32], index: 9, kind: input, shape index: {}]   ;;  %s2480_s10 = inlined_call_operand.hbm [shape: f32[32,32], index: 10, kind: input, shape index: {}]   ;;  %s2481_s11 = inlined_call_operand.vmem [shape: f32[1,32], index: 11, kind: input, shape index: {}]   ;;  %s2482_s12 = inlined_call_operand.hbm [shape: f32[16,32], index: 12, kind: output, shape index: {}]  }
   0x1   :  { %18 = vsyncpa [#allocation7], 0 }
   0x2   :  { %19 = vsyncpa [#allocation10], 0 }
   0x3   :  { %20 = vsyncpa [#allocation13], 0 }
   0x4   :  { %21 = vsyncpa [#allocation16], 0 }
   0x5   :  { %22 = vsyncpa [#allocation5], 0  ;;  %s40_s23 = sshll.u32 %s2471_s1, 4  ;;  %s2133_s24 = smov [#allocation6]   ;;  %s41_s23 = int_to_ptr.hbm [resolvable:$true] %s40_s23 }
   0x6   :  { %s42_s25 = sshll.u32 %s2133_s24, 4  ;;  %s66_s28 = sshll.u32 %s2473_s3, 4  ;;  %s43_s25 = int_to_ptr.vmem [resolvable:$true] %s42_s25  ;;  %s67_s28 = int_to_ptr.hbm [resolvable:$true] %s66_s28 }
   0x7   :  { %s2134_s29 = smov 64   ;;  %s2135_s30 = smov 4  }
   0x8   :  { %48 = dma.hbm_to_vmem [thread:$0]  %s41_s23, 1024, %s43_s25, [#allocation7], %s2134_s29, %s2134_s29, %s2135_s30  }
   0x9   :  { %s2136_s13 = smov [#allocation9]   ;;  %s92_s1 = sshll.u32 %s2475_s5, 4  ;;  %s93_s1 = int_to_ptr.hbm [resolvable:$true] %s92_s1 }
   0xa   :  { %s68_s14 = sshll.u32 %s2136_s13, 4  ;;  %s2137_s3 = smov [#allocation12]   ;;  %s69_s14 = int_to_ptr.vmem [resolvable:$true] %s68_s14 }
   0xb   :  { %74 = dma.hbm_to_vmem [thread:$0]  %s67_s28, 256, %s69_s14, [#allocation10], %s2134_s29, %s2134_s29, %s2135_s30  }
   0xc   :  { %s94_s17 = sshll.u32 %s2137_s3, 4  ;;  %s120_s20 = sshll.u32 %s2478_s8, 4  ;;  %s95_s17 = int_to_ptr.vmem [resolvable:$true] %s94_s17  ;;  %s121_s20 = int_to_ptr.hbm [resolvable:$true] %s120_s20 }
   0xd   :  { %100 = dma.hbm_to_vmem [thread:$0]  %s93_s1, 256, %s95_s17, [#allocation13], %s2134_s29, %s2134_s29, %s2135_s30  }
   0xe   :  { %s2138_s21 = smov [#allocation15]   ;;  %s27_s24 = sshll.u32 %s2470_s0, 4  ;;  %s28_s24 = int_to_ptr.hbm [resolvable:$true] %s27_s24 }
   0xf   :  { %s122_s5 = sshll.u32 %s2138_s21, 4  ;;  %s2139_s25 = smov 128   ;;  %s123_s5 = int_to_ptr.vmem [resolvable:$true] %s122_s5 }
  0x10   :  { %s2140_s26 = smov 8   ;;  %s53_s28 = sshll.u32 %s2472_s2, 4  ;;  %s54_s28 = int_to_ptr.hbm [resolvable:$true] %s53_s28 }
  0x11   :  { %128 = dma.hbm_to_vmem [thread:$0]  %s121_s20, 512, %s123_s5, [#allocation16], %s2139_s25, %s2139_s25, %s2140_s26  }
  0x12   :  { %s2141_s13 = smov [#allocation3]   ;;  %s2142_s0 = smov [#allocation8]  }
  0x13   :  { %s29_s14 = sshll.u32 %s2141_s13, 4  ;;  %s55_s15 = sshll.u32 %s2142_s0, 4  ;;  %s30_s14 = int_to_ptr.vmem [resolvable:$true] %s29_s14  ;;  %s56_s15 = int_to_ptr.vmem [resolvable:$true] %s55_s15 }
  0x14   :  { %35 = dma.hbm_to_vmem [thread:$0]  %s28_s24, 1024, %s30_s14, [#allocation4], %s2134_s29, %s2134_s29, %s2135_s30  }
  0x15   :  { %s79_s3 = sshll.u32 %s2474_s4, 4  ;;  %s107_s18 = sshll.u32 %s2477_s7, 4  ;;  %s80_s3 = int_to_ptr.hbm [resolvable:$true] %s79_s3  ;;  %s108_s18 = int_to_ptr.hbm [resolvable:$true] %s107_s18 }
  0x16   :  { %61 = dma.hbm_to_vmem [thread:$0]  %s54_s28, 256, %s56_s15, [#allocation7], %s2139_s25, %s2139_s25, %s2140_s26  }
  0x17   :  { %s2143_s19 = smov [#allocation11]   ;;  %s2144_s21 = smov [#allocation14]  }
  0x18   :  { %s81_s20 = sshll.u32 %s2143_s19, 4  ;;  %s109_s4 = sshll.u32 %s2144_s21, 4  ;;  %s82_s20 = int_to_ptr.vmem [resolvable:$true] %s81_s20  ;;  %s110_s4 = int_to_ptr.vmem [resolvable:$true] %s109_s4 }
  0x19   :  { %87 = dma.hbm_to_vmem [thread:$0]  %s80_s3, 256, %s82_s20, [#allocation10], %s2134_s29, %s2134_s29, %s2135_s30  }
  0x1a   :  { %s135_s23 = sshll.u32 %s2480_s10, 4  ;;  %s2145_s7 = smov [#allocation17]   ;;  %s136_s23 = int_to_ptr.hbm [resolvable:$true] %s135_s23 }
  0x1b   :  { %115 = dma.hbm_to_vmem [thread:$0]  %s108_s18, 512, %s110_s4, [#allocation13], %s2139_s25, %s2139_s25, %s2140_s26  }
  0x1c   :  { %s137_s24 = sshll.u32 %s2145_s7, 4  ;;  %s138_s24 = int_to_ptr.vmem [resolvable:$true] %s137_s24 }
  0x1d   :  { %143 = dma.hbm_to_vmem [thread:$0]  %s136_s23, 512, %s138_s24, [#allocation16], %s2139_s25, %s2139_s25, %s2140_s26  }
  0x1e   :  { %2121 = dma.done.wait [#allocation4], 1024  }
  0x1f   :  { %2122 = vsyncadd [#allocation4], 4294966272 }
  0x20   :  { %2123 = dma.done.wait [#allocation7], 1280  }
  0x21   :  { %2124 = vsyncadd [#allocation7], 4294966016 }
  0x22   :  { %2125 = dma.done.wait [#allocation10], 512  }
  0x23   :  { %2126 = vsyncadd [#allocation10], 4294966784 }
  0x24   :  { %2127 = dma.done.wait [#allocation13], 768  }
  0x25   :  { %2128 = vsyncadd [#allocation13], 4294966528 }
  0x26   :  { %2129 = dma.done.wait [#allocation16], 1024  }
  0x27   :  { %2130 = vsyncadd [#allocation16], 4294966272  ;;  %v1679_v0 = vld [vmem:[#allocation11 + $0x8] sm:$0xff]  ;;  %v1677_v1 = vld [vmem:[#allocation9 + $0x8] sm:$0xff]  ;;  %vm275_vm0 = vcmask 261120   ;;  %v2146_v10 = vmov 0  }
  0x28   :  { %306 = vmatpush.bf16.msra.mxu0 %v1679_v0  ;;  %1761 = vmatpush.bf16.msra.mxu3 %v1679_v0  ;;  %v1678_v2 = vld [vmem:[#allocation11] sm:$0xff]  ;;  %v1676_v3 = vld [vmem:[#allocation9] sm:$0xff]  ;;  %v2268_v4 = vld [vmem:[#allocation12 + $0x8] sm:$0xff]  ;;  %s2147_s8 = smov 32   ;;  %s1494_s1 = sshll.u32 %s2482_s12, 4  ;;  %s1495_s1 = int_to_ptr.hbm [resolvable:$true] %s1494_s1 }
  0x29   :  { %431 = vmatpush.bf16.msra.mxu1 %v1677_v1  ;;  %1763 = vmatpush.bf16.msra.mxu2 %v1677_v1  ;;  %v1668_v5 = vld [vmem:[#allocation6] sm:$0xff]  ;;  %v1675_v6 = vld [vmem:[#allocation6 + $0x38] sm:$0xff]  ;;  %v2271_v9 = vld [vmem:[#allocation12] sm:$0xff] }
  0x2a   :  { %v1660_v7 = vld [vmem:[#allocation3] sm:$0xff]  ;;  %v1667_v8 = vld [vmem:[#allocation3 + $0x38] sm:$0xff] }
  0x2b   :  { %v2289_v20 = vld [vmem:[%s2476_s6] ss:$0 sm:$0xff] }
  0x2c   :  { %307 = vmatpush.bf16.msra.mxu0 %v1678_v2  ;;  %1762 = vmatpush.bf16.msra.mxu3 %v1678_v2 }
  0x2d   :  { %432 = vmatpush.bf16.msra.mxu1 %v1676_v3  ;;  %1764 = vmatpush.bf16.msra.mxu2 %v1676_v3 }
  0x2f   :  { %1551 = vmatmul.msk.bf16.vlgmr.msra.gmra.mxu0 %vm275_vm0, %v1668_v5  ;;  %1558 = vmatmul.msk.bf16.vlgmr.msra.gmra.mxu3 %vm275_vm0, %v1675_v6 }
  0x30   :  { %659 = vmatpush.bf16.msrb.mxu3 %v2268_v4  ;;  %1599 = vmatmul.msk.bf16.vlgmr.msra.gmra.mxu1 %vm275_vm0, %v1660_v7 }
  0x31   :  { %555 = vmatpush.bf16.msrb.mxu2 %v2268_v4 }
  0x32   :  { %1606 = vmatmul.msk.bf16.vlgmr.msra.gmra.mxu2 %vm275_vm0, %v1667_v8 }
  0x34   :  { %660 = vmatpush.bf16.msrb.mxu3 %v2271_v9 }
  0x35   :  { %556 = vmatpush.bf16.msrb.mxu2 %v2271_v9 }
  0x38   :  { %867 = vmatpush.bf16.msra.mxu3 %v2268_v4 }
  0x39   :  { %763 = vmatpush.bf16.msra.mxu2 %v2268_v4 }
  0x3c   :  { %868 = vmatpush.bf16.msra.mxu3 %v2271_v9 }
  0x3d   :  { %764 = vmatpush.bf16.msra.mxu2 %v2271_v9 }
  0x42   :  { %557 = vmatmul.bf16.vlgmr.msrb.gmra.mxu2 %v2146_v10 }
  0x43   :  { %971 = vmatpush.bf16.msrb.mxu2 %v2268_v4 }
  0x47   :  { %972 = vmatpush.bf16.msrb.mxu2 %v2271_v9 }
  0xac   :  { %v309_v11 = vpop.f32.mrf.mxu0 }
  0xad   :  { %v434_v12 = vpop.f32.mrf.mxu1 }
  0xae   :  { %v435_v19 = vadd.f32 %v434_v12, %v309_v11 }
  0xb0   :  { %v478_v24 = vadd.f32 %v2289_v20, %v435_v19 }
  0xb2   :  { %v344_v13 = vpop.f32.mrf.mxu3 }
  0xb4   :  { %v311_v16 = vpop.f32.mrf.mxu0 }
  0xb5   :  { %v469_v14 = vpop.f32.mrf.mxu2  ;;  %v436_v17 = vpop.f32.mrf.mxu1 }
  0xb6   :  { %v470_v15 = vadd.f32 %v469_v14, %v344_v13  ;;  %v437_v18 = vadd.f32 %v436_v17, %v311_v16  ;;  %v1669_v16 = vld [vmem:[#allocation6 + $0x8] sm:$0xff] }
  0xb7   :  { %v1661_v17 = vld [vmem:[#allocation3 + $0x8] sm:$0xff]  ;;  %1552 = vmatmul.msk.bf16.gmra.mxu0 %vm275_vm0, %v1669_v16 }
  0xb8   :  { %v479_v21 = vadd.f32 %v2289_v20, %v437_v18  ;;  %v492_v26 = vadd.f32 %v2289_v20, %v470_v15  ;;  %1600 = vmatmul.msk.bf16.gmra.mxu1 %vm275_vm0, %v1661_v17 }
  0xba   :  { %v346_v22 = vpop.f32.mrf.mxu3  ;;  %v1685_v28 = vpack.c.bf16 %v479_v21, %v478_v24 }
  0xbc   :  { %v1724_v30 = vunpack.c.l.bf16 %v1685_v28  ;;  %v1725_v34 = vunpack.c.h.bf16 %v1685_v28 }
  0xbd   :  { %v471_v23 = vpop.f32.mrf.mxu2 }
  0xbe   :  { %v472_v25 = vadd.f32 %v471_v23, %v346_v22 }
  0xc0   :  { %v493_v27 = vadd.f32 %v2289_v20, %v472_v25 }
  0xc2   :  { %v2295_v29 = vpack.c.bf16 %v493_v27, %v492_v26 }
  0xc5   :  { %v558_v31 = vpop.f32.mrf.mxu2 }
  0xc6   :  { %v563_v32 = vadd.f32 %v1724_v30, %v558_v31 }
  0xc8   :  { %v1615_v33 = vmul.f32 -1.442695, %v563_v32 }
  0xca   :  { %1784 = vpow2.f32 %v1615_v33 }
  0xcd   :  { %v560_v35 = vpop.f32.mrf.mxu2 }
  0xce   :  { %v564_v36 = vadd.f32 %v1725_v34, %v560_v35 }
  0xd0   :  { %v1785_v37 = vpop.eup %1784  ;;  %v1616_v38 = vmul.f32 -1.442695, %v564_v36 }
  0xd1   :  { %v571_v39 = vadd.f32 1.0, %v1785_v37 }
  0xd2   :  { %1786 = vpow2.f32 %v1616_v38 }
  0xd3   :  { %1788 = vrcp.f32 %v571_v39  ;;  %v584_v45 = vand.u32 2147483648, %v571_v39  ;;  %v582_v47 = vand.u32 2147483647, %v571_v39  ;;  %vm578_vm2 = vweird.f32 %v571_v39 }
  0xd5   :  { %v585_v50 = vor.u32 1.1754944e-38, %v584_v45  ;;  %vm583_vm4 = vcmp.eq.f32.partialorder %v582_v47, 8.507059e+37 }
  0xd8   :  { %v1787_v40 = vpop.eup %1786 }
  0xd9   :  { %v1789_v41 = vpop.eup %1788  ;;  %v572_v42 = vadd.f32 1.0, %v1787_v40 }
  0xda   :  { %v574_v43 = vmul.f32 %v1789_v41, %v571_v39  ;;  %vm579_vm1 = vweird.f32 %v1789_v41 }
  0xdb   :  { %1790 = vrcp.f32 %v572_v42  ;;  %vm580_vm3 = vmor %vm578_vm2, %vm579_vm1  ;;  %v599_v56 = vand.u32 2147483648, %v572_v42  ;;  %v597_v59 = vand.u32 2147483647, %v572_v42  ;;  %vm593_vm6 = vweird.f32 %v572_v42 }
  0xdc   :  { %v575_v44 = vsub.f32 1.0, %v574_v43 }
  0xdd   :  { %v600_v61 = vor.u32 1.1754944e-38, %v599_v56  ;;  %vm598_vm8 = vcmp.eq.f32.partialorder %v597_v59, 8.507059e+37 }
  0xde   :  { %v576_v46 = vmul.f32 %v1789_v41, %v575_v44 }
  0xe0   :  { %v577_v48 = vadd.f32 %v1789_v41, %v576_v46 }
  0xe1   :  { %v1791_v49 = vpop.eup %1790 }
  0xe2   :  { %v589_v51 = vmul.f32 %v1791_v49, %v572_v42  ;;  %v581_v52 = vsel %vm580_vm3, %v1789_v41, %v577_v48  ;;  %vm594_vm5 = vweird.f32 %v1791_v49 }
  0xe3   :  { %v586_v53 = vsel %vm583_vm4, %v585_v50, %v581_v52  ;;  %vm595_vm7 = vmor %vm593_vm6, %vm594_vm5 }
  0xe4   :  { %v590_v54 = vsub.f32 1.0, %v589_v51  ;;  %v603_v55 = vmul.f32 2.0, %v586_v53  ;;  %v607_v7 = vmul.f32 0.0, %v586_v53 }
  0xe6   :  { %v1617_v57 = vadd.f32 -1.0, %v603_v55  ;;  %v591_v58 = vmul.f32 %v1791_v49, %v590_v54 }
  0xe8   :  { %611 = vrot.lane.b32.xlu0 %v1617_v57, %s2134_s29  ;;  %v592_v60 = vadd.f32 %v1791_v49, %v591_v58 }
  0xea   :  { %v596_v62 = vsel %vm595_vm7, %v1791_v49, %v592_v60 }
  0xeb   :  { %v601_v63 = vsel %vm598_vm8, %v600_v61, %v596_v62 }
  0xec   :  { %v604_v0 = vmul.f32 2.0, %v601_v63  ;;  %v608_v11 = vmul.f32 0.0, %v601_v63 }
  0xee   :  { %v1618_v1 = vadd.f32 -1.0, %v604_v0 }
  0xf0   :  { %613 = vrot.lane.b32.xlu0 %v1618_v1, %s2134_s29 }
 0x134   :  { %v314_v25 = vpop.f32.mrf.mxu0 }
 0x135   :  { %v439_v26 = vpop.f32.mrf.mxu1 }
 0x136   :  { %v440_v30 = vadd.f32 %v439_v26, %v314_v25 }
 0x138   :  { %v480_v32 = vadd.f32 %v2289_v20, %v440_v30 }
 0x13c   :  { %v316_v27 = vpop.f32.mrf.mxu0 }
 0x13d   :  { %v441_v28 = vpop.f32.mrf.mxu1 }
 0x13e   :  { %v442_v31 = vadd.f32 %v441_v28, %v316_v27 }
 0x140   :  { %v481_v33 = vadd.f32 %v2289_v20, %v442_v31 }
 0x142   :  { %v1690_v34 = vpack.c.bf16 %v481_v33, %v480_v32 }
 0x144   :  { %v1728_v35 = vunpack.c.l.bf16 %v1690_v34  ;;  %v1729_v39 = vunpack.c.h.bf16 %v1690_v34 }
 0x15a   :  { %v612_v2 = vpop.permute.xlu0 %611 }
 0x15b   :  { %v617_v3 = vmul.f32 %v612_v2, %v586_v53 }
 0x15d   :  { %621 = vrot.lane.b32.xlu1 %v617_v3, %s2147_s8 }
 0x162   :  { %v614_v5 = vpop.permute.xlu0 %613 }
 0x163   :  { %v618_v6 = vmul.f32 %v614_v5, %v601_v63 }
 0x165   :  { %623 = vrot.lane.b32.xlu1 %v618_v6, %s2147_s8 }
 0x1cf   :  { %v622_v8 = vpop.permute.xlu1 %621 }
 0x1d0   :  { %v2301_v10 = vadd.f32 %v622_v8, %v607_v7 }
 0x1d2   :  { %1792 = vtanh.f32 %v2301_v10 }
 0x1d7   :  { %v624_v12 = vpop.permute.xlu1 %623 }
 0x1d8   :  { %v1793_v13 = vpop.eup %1792  ;;  %v2304_v14 = vadd.f32 %v624_v12, %v608_v11 }
 0x1d9   :  { %633 = vrot.lane.b32.xlu2 %v1793_v13, %s2134_s29 }
 0x1da   :  { %1794 = vtanh.f32 %v2304_v14 }
 0x1e0   :  { %v1795_v15 = vpop.eup %1794 }
 0x1e1   :  { %635 = vrot.lane.b32.xlu2 %v1795_v15, %s2134_s29 }
 0x233   :  { %v634_v18 = vpop.permute.xlu2 %633 }
 0x234   :  { %v639_v21 = vmul.f32 %v634_v18, %v586_v53 }
 0x23b   :  { %v636_v19 = vpop.permute.xlu2 %635 }
 0x23c   :  { %v640_v22 = vmul.f32 %v636_v19, %v601_v63 }
 0x23e   :  { %v646_v23 = vpack.c.bf16 %v640_v22, %v639_v21 }
 0x240   :  { %648 = vrot.lane.b32.xlu0 %v646_v23, %s2147_s8 }
 0x2b2   :  { %v649_v24 = vpop.permute.xlu0 %648 }
 0x2b3   :  { %1619 = vmatmul.msk.bf16.vlgmr.msrb.gmra.mxu3 %vm275_vm0, %v649_v24  ;;  %v1670_v24 = vld [vmem:[#allocation6 + $0x10] sm:$0xff] }
 0x2b4   :  { %1075 = vmatpush.bf16.msrb.mxu3 %v2268_v4  ;;  %1553 = vmatmul.msk.bf16.gmra.mxu0 %vm275_vm0, %v1670_v24 }
 0x2b8   :  { %1076 = vmatpush.bf16.msrb.mxu3 %v2271_v9 }
 0x331   :  { %v319_v31 = vpop.f32.mrf.mxu0 }
 0x336   :  { %v662_v36 = vpop.f32.mrf.mxu3 }
 0x337   :  { %v667_v37 = vadd.f32 %v1728_v35, %v662_v36 }
 0x339   :  { %v1620_v38 = vmul.f32 -1.442695, %v667_v37  ;;  %v321_v33 = vpop.f32.mrf.mxu0 }
 0x33b   :  { %1796 = vpow2.f32 %v1620_v38 }
 0x33e   :  { %v664_v40 = vpop.f32.mrf.mxu3 }
 0x33f   :  { %v668_v41 = vadd.f32 %v1729_v39, %v664_v40 }
 0x341   :  { %v1797_v42 = vpop.eup %1796  ;;  %v1621_v43 = vmul.f32 -1.442695, %v668_v41 }
 0x342   :  { %v675_v44 = vadd.f32 1.0, %v1797_v42 }
 0x343   :  { %1798 = vpow2.f32 %v1621_v43 }
 0x344   :  { %1800 = vrcp.f32 %v675_v44  ;;  %v688_v50 = vand.u32 2147483648, %v675_v44  ;;  %v686_v52 = vand.u32 2147483647, %v675_v44  ;;  %vm682_vm10 = vweird.f32 %v675_v44 }
 0x346   :  { %v689_v55 = vor.u32 1.1754944e-38, %v688_v50  ;;  %vm687_vm12 = vcmp.eq.f32.partialorder %v686_v52, 8.507059e+37 }
 0x349   :  { %v1799_v45 = vpop.eup %1798 }
 0x34a   :  { %v1801_v46 = vpop.eup %1800  ;;  %v676_v47 = vadd.f32 1.0, %v1799_v45 }
 0x34b   :  { %v678_v48 = vmul.f32 %v1801_v46, %v675_v44  ;;  %vm683_vm9 = vweird.f32 %v1801_v46 }
 0x34c   :  { %1802 = vrcp.f32 %v676_v47  ;;  %vm684_vm11 = vmor %vm682_vm10, %vm683_vm9  ;;  %v703_v61 = vand.u32 2147483648, %v676_v47  ;;  %v701_v0 = vand.u32 2147483647, %v676_v47  ;;  %vm697_vm14 = vweird.f32 %v676_v47 }
 0x34d   :  { %v679_v49 = vsub.f32 1.0, %v678_v48 }
 0x34e   :  { %v704_v2 = vor.u32 1.1754944e-38, %v703_v61  ;;  %vm702_vm1 = vcmp.eq.f32.partialorder %v701_v0, 8.507059e+37 }
 0x34f   :  { %v680_v51 = vmul.f32 %v1801_v46, %v679_v49 }
 0x351   :  { %v681_v53 = vadd.f32 %v1801_v46, %v680_v51 }
 0x352   :  { %v1803_v54 = vpop.eup %1802 }
 0x353   :  { %v693_v56 = vmul.f32 %v1803_v54, %v676_v47  ;;  %v685_v57 = vsel %vm684_vm11, %v1801_v46, %v681_v53  ;;  %vm698_vm13 = vweird.f32 %v1803_v54 }
 0x354   :  { %v690_v58 = vsel %vm687_vm12, %v689_v55, %v685_v57  ;;  %vm699_vm15 = vmor %vm697_vm14, %vm698_vm13 }
 0x355   :  { %v694_v59 = vsub.f32 1.0, %v693_v56  ;;  %v707_v60 = vmul.f32 2.0, %v690_v58  ;;  %v711_v19 = vmul.f32 %v690_v58, %v2301_v10 }
 0x357   :  { %v1622_v62 = vadd.f32 -1.0, %v707_v60  ;;  %v695_v63 = vmul.f32 %v1803_v54, %v694_v59 }
 0x359   :  { %715 = vrot.lane.b32.xlu1 %v1622_v62, %s2134_s29  ;;  %v696_v1 = vadd.f32 %v1803_v54, %v695_v63 }
 0x35b   :  { %v700_v3 = vsel %vm699_vm15, %v1803_v54, %v696_v1 }
 0x35c   :  { %v705_v5 = vsel %vm702_vm1, %v704_v2, %v700_v3 }
 0x35d   :  { %v708_v6 = vmul.f32 2.0, %v705_v5  ;;  %v712_v15 = vmul.f32 %v705_v5, %v2304_v14  ;;  %v1662_v14 = vld [vmem:[#allocation3 + $0x10] sm:$0xff] }
 0x35e   :  { %1601 = vmatmul.msk.bf16.gmra.mxu1 %vm275_vm0, %v1662_v14 }
 0x35f   :  { %v1623_v7 = vadd.f32 -1.0, %v708_v6 }
 0x361   :  { %717 = vrot.lane.b32.xlu2 %v1623_v7, %s2134_s29 }
 0x3bb   :  { %v718_v8 = vpop.permute.xlu2 %717 }
 0x3bc   :  { %v722_v11 = vmul.f32 %v718_v8, %v705_v5 }
 0x3be   :  { %727 = vrot.lane.b32.xlu1 %v722_v11, %s2147_s8 }
 0x3cb   :  { %v716_v12 = vpop.permute.xlu1 %715 }
 0x3cc   :  { %v721_v13 = vmul.f32 %v716_v12, %v690_v58 }
 0x3ce   :  { %725 = vrot.lane.b32.xlu0 %v721_v13, %s2147_s8 }
 0x3db   :  { %v444_v32 = vpop.f32.mrf.mxu1 }
 0x3dc   :  { %v445_v35 = vadd.f32 %v444_v32, %v319_v31 }
 0x3de   :  { %v482_v37 = vadd.f32 %v2289_v20, %v445_v35 }
 0x3e3   :  { %v446_v34 = vpop.f32.mrf.mxu1 }
 0x3e4   :  { %v447_v36 = vadd.f32 %v446_v34, %v321_v33 }
 0x3e6   :  { %v483_v38 = vadd.f32 %v2289_v20, %v447_v36 }
 0x3e8   :  { %v1695_v39 = vpack.c.bf16 %v483_v38, %v482_v37 }
 0x3ea   :  { %v1732_v40 = vunpack.c.l.bf16 %v1695_v39  ;;  %v1733_v44 = vunpack.c.h.bf16 %v1695_v39 }
 0x430   :  { %v728_v16 = vpop.permute.xlu1 %727 }
 0x431   :  { %v2322_v17 = vadd.f32 %v728_v16, %v712_v15 }
 0x433   :  { %1804 = vtanh.f32 %v2322_v17 }
 0x439   :  { %v1805_v18 = vpop.eup %1804 }
 0x43a   :  { %739 = vrot.lane.b32.xlu0 %v1805_v18, %s2134_s29 }
 0x440   :  { %v726_v21 = vpop.permute.xlu0 %725 }
 0x441   :  { %v2327_v22 = vadd.f32 %v726_v21, %v711_v19 }
 0x443   :  { %1806 = vtanh.f32 %v2327_v22 }
 0x449   :  { %v1807_v23 = vpop.eup %1806 }
 0x44a   :  { %737 = vrot.lane.b32.xlu2 %v1807_v23, %s2134_s29 }
 0x4a4   :  { %v738_v25 = vpop.permute.xlu2 %737 }
 0x4a5   :  { %v743_v27 = vmul.f32 %v738_v25, %v690_v58 }
 0x4ac   :  { %v740_v26 = vpop.permute.xlu0 %739 }
 0x4ad   :  { %v744_v28 = vmul.f32 %v740_v26, %v705_v5 }
 0x4af   :  { %v750_v30 = vpack.c.bf16 %v744_v28, %v743_v27 }
 0x4b1   :  { %752 = vrot.lane.b32.xlu1 %v750_v30, %s2147_s8 }
 0x523   :  { %v753_v10 = vpop.permute.xlu1 %752 }
 0x524   :  { %1624 = vmatmul.msk.bf16.vlgmr.msra.gmra.mxu2 %vm275_vm0, %v753_v10  ;;  %v1671_v10 = vld [vmem:[#allocation6 + $0x18] sm:$0xff] }
 0x525   :  { %1179 = vmatpush.bf16.msra.mxu2 %v2268_v4  ;;  %1554 = vmatmul.msk.bf16.gmra.mxu0 %vm275_vm0, %v1671_v10 }
 0x529   :  { %1180 = vmatpush.bf16.msra.mxu2 %v2271_v9 }
 0x5a2   :  { %v324_v36 = vpop.f32.mrf.mxu0 }
 0x5a7   :  { %v766_v41 = vpop.f32.mrf.mxu2 }
 0x5a8   :  { %v771_v42 = vadd.f32 %v1732_v40, %v766_v41 }
 0x5aa   :  { %v1625_v43 = vmul.f32 -1.442695, %v771_v42  ;;  %v326_v38 = vpop.f32.mrf.mxu0 }
 0x5ac   :  { %1808 = vpow2.f32 %v1625_v43 }
 0x5af   :  { %v768_v45 = vpop.f32.mrf.mxu2 }
 0x5b0   :  { %v772_v46 = vadd.f32 %v1733_v44, %v768_v45 }
 0x5b2   :  { %v1809_v47 = vpop.eup %1808  ;;  %v1626_v48 = vmul.f32 -1.442695, %v772_v46 }
 0x5b3   :  { %v779_v49 = vadd.f32 1.0, %v1809_v47 }
 0x5b4   :  { %1810 = vpow2.f32 %v1626_v48 }
 0x5b5   :  { %1812 = vrcp.f32 %v779_v49  ;;  %v792_v55 = vand.u32 2147483648, %v779_v49  ;;  %v790_v57 = vand.u32 2147483647, %v779_v49  ;;  %vm786_vm3 = vweird.f32 %v779_v49 }
 0x5b7   :  { %v793_v60 = vor.u32 1.1754944e-38, %v792_v55  ;;  %vm791_vm5 = vcmp.eq.f32.partialorder %v790_v57, 8.507059e+37 }
 0x5ba   :  { %v1811_v50 = vpop.eup %1810 }
 0x5bb   :  { %v1813_v51 = vpop.eup %1812  ;;  %v780_v52 = vadd.f32 1.0, %v1811_v50 }
 0x5bc   :  { %v782_v53 = vmul.f32 %v1813_v51, %v779_v49  ;;  %vm787_vm2 = vweird.f32 %v1813_v51 }
 0x5bd   :  { %1814 = vrcp.f32 %v780_v52  ;;  %vm788_vm4 = vmor %vm786_vm3, %vm787_vm2  ;;  %v807_v2 = vand.u32 2147483648, %v780_v52  ;;  %v805_v6 = vand.u32 2147483647, %v780_v52  ;;  %vm801_vm7 = vweird.f32 %v780_v52 }
 0x5be   :  { %v783_v54 = vsub.f32 1.0, %v782_v53 }
 0x5bf   :  { %v808_v8 = vor.u32 1.1754944e-38, %v807_v2  ;;  %vm806_vm9 = vcmp.eq.f32.partialorder %v805_v6, 8.507059e+37 }
 0x5c0   :  { %v784_v56 = vmul.f32 %v1813_v51, %v783_v54 }
 0x5c2   :  { %v785_v58 = vadd.f32 %v1813_v51, %v784_v56 }
 0x5c3   :  { %v1815_v59 = vpop.eup %1814 }
 0x5c4   :  { %v797_v61 = vmul.f32 %v1815_v59, %v780_v52  ;;  %v789_v62 = vsel %vm788_vm4, %v1813_v51, %v785_v58  ;;  %vm802_vm6 = vweird.f32 %v1815_v59 }
 0x5c5   :  { %v794_v63 = vsel %vm791_vm5, %v793_v60, %v789_v62  ;;  %vm803_vm8 = vmor %vm801_vm7, %vm802_vm6 }
 0x5c6   :  { %v798_v0 = vsub.f32 1.0, %v797_v61  ;;  %v811_v1 = vmul.f32 2.0, %v794_v63  ;;  %v815_v23 = vmul.f32 %v794_v63, %v2327_v22  ;;  %v1663_v22 = vld [vmem:[#allocation3 + $0x18] sm:$0xff] }
 0x5c7   :  { %1602 = vmatmul.msk.bf16.gmra.mxu1 %vm275_vm0, %v1663_v22 }
 0x5c8   :  { %v1627_v3 = vadd.f32 -1.0, %v811_v1  ;;  %v799_v5 = vmul.f32 %v1815_v59, %v798_v0 }
 0x5ca   :  { %819 = vrot.lane.b32.xlu2 %v1627_v3, %s2134_s29  ;;  %v800_v7 = vadd.f32 %v1815_v59, %v799_v5 }
 0x5cc   :  { %v804_v11 = vsel %vm803_vm8, %v1815_v59, %v800_v7 }
 0x5cd   :  { %v809_v12 = vsel %vm806_vm9, %v808_v8, %v804_v11 }
 0x5ce   :  { %v812_v13 = vmul.f32 2.0, %v809_v12  ;;  %v816_v25 = vmul.f32 %v809_v12, %v2322_v17 }
 0x5d0   :  { %v1628_v15 = vadd.f32 -1.0, %v812_v13 }
 0x5d2   :  { %821 = vrot.lane.b32.xlu0 %v1628_v15, %s2134_s29 }
 0x624   :  { %v820_v16 = vpop.permute.xlu2 %819 }
 0x625   :  { %v825_v18 = vmul.f32 %v820_v16, %v794_v63 }
 0x627   :  { %829 = vrot.lane.b32.xlu1 %v825_v18, %s2147_s8 }
 0x644   :  { %v822_v19 = vpop.permute.xlu0 %821  ;;  %v449_v37 = vpop.f32.mrf.mxu1 }
 0x645   :  { %v826_v21 = vmul.f32 %v822_v19, %v809_v12  ;;  %v450_v40 = vadd.f32 %v449_v37, %v324_v36 }
 0x647   :  { %831 = vrot.lane.b32.xlu2 %v826_v21, %s2147_s8  ;;  %v484_v42 = vadd.f32 %v2289_v20, %v450_v40 }
 0x64c   :  { %v451_v39 = vpop.f32.mrf.mxu1 }
 0x64d   :  { %v452_v41 = vadd.f32 %v451_v39, %v326_v38 }
 0x64f   :  { %v485_v43 = vadd.f32 %v2289_v20, %v452_v41 }
 0x651   :  { %v1700_v44 = vpack.c.bf16 %v485_v43, %v484_v42 }
 0x653   :  { %v1736_v45 = vunpack.c.l.bf16 %v1700_v44  ;;  %v1737_v49 = vunpack.c.h.bf16 %v1700_v44 }
 0x699   :  { %v830_v24 = vpop.permute.xlu1 %829 }
 0x69a   :  { %v2344_v14 = vadd.f32 %v830_v24, %v815_v23 }
 0x69c   :  { %1816 = vtanh.f32 %v2344_v14 }
 0x6a1   :  { %v832_v26 = vpop.permute.xlu2 %831 }
 0x6a2   :  { %v1817_v27 = vpop.eup %1816  ;;  %v2348_v28 = vadd.f32 %v832_v26, %v816_v25 }
 0x6a3   :  { %841 = vrot.lane.b32.xlu0 %v1817_v27, %s2134_s29 }
 0x6a4   :  { %1818 = vtanh.f32 %v2348_v28 }
 0x6aa   :  { %v1819_v30 = vpop.eup %1818 }
 0x6ab   :  { %843 = vrot.lane.b32.xlu1 %v1819_v30, %s2134_s29 }
 0x715   :  { %v842_v31 = vpop.permute.xlu0 %841 }
 0x716   :  { %v847_v17 = vmul.f32 %v842_v31, %v794_v63 }
 0x71d   :  { %v844_v32 = vpop.permute.xlu1 %843 }
 0x71e   :  { %v848_v33 = vmul.f32 %v844_v32, %v809_v12 }
 0x720   :  { %v854_v34 = vpack.c.bf16 %v848_v33, %v847_v17  ;;  %v1672_v33 = vld [vmem:[#allocation6 + $0x20] sm:$0xff] }
 0x721   :  { %1555 = vmatmul.msk.bf16.gmra.mxu0 %vm275_vm0, %v1672_v33 }
 0x722   :  { %856 = vrot.lane.b32.xlu2 %v854_v34, %s2147_s8 }
 0x77c   :  { %v857_v35 = vpop.permute.xlu2 %856 }
 0x77d   :  { %1629 = vmatmul.msk.bf16.vlgmr.msra.gmra.mxu3 %vm275_vm0, %v857_v35 }
 0x77e   :  { %1283 = vmatpush.bf16.msra.mxu3 %v2268_v4 }
 0x782   :  { %1284 = vmatpush.bf16.msra.mxu3 %v2271_v9 }
 0x79e   :  { %v329_v39 = vpop.f32.mrf.mxu0 }
 0x7a6   :  { %v331_v41 = vpop.f32.mrf.mxu0 }
 0x800   :  { %v870_v46 = vpop.f32.mrf.mxu3 }
 0x801   :  { %v875_v47 = vadd.f32 %v1736_v45, %v870_v46 }
 0x803   :  { %v1630_v48 = vmul.f32 -1.442695, %v875_v47 }
 0x805   :  { %1820 = vpow2.f32 %v1630_v48 }
 0x808   :  { %v872_v4 = vpop.f32.mrf.mxu3 }
 0x809   :  { %v876_v50 = vadd.f32 %v1737_v49, %v872_v4 }
 0x80b   :  { %v1821_v9 = vpop.eup %1820  ;;  %v1631_v51 = vmul.f32 -1.442695, %v876_v50 }
 0x80c   :  { %v883_v52 = vadd.f32 1.0, %v1821_v9 }
 0x80d   :  { %1822 = vpow2.f32 %v1631_v51 }
 0x80e   :  { %1824 = vrcp.f32 %v883_v52  ;;  %v896_v58 = vand.u32 2147483648, %v883_v52  ;;  %v894_v60 = vand.u32 2147483647, %v883_v52  ;;  %vm890_vm11 = vweird.f32 %v883_v52 }
 0x810   :  { %v897_v63 = vor.u32 1.1754944e-38, %v896_v58  ;;  %vm895_vm13 = vcmp.eq.f32.partialorder %v894_v60, 8.507059e+37 }
 0x813   :  { %v1823_v53 = vpop.eup %1822 }
 0x814   :  { %v1825_v54 = vpop.eup %1824  ;;  %v884_v55 = vadd.f32 1.0, %v1823_v53 }
 0x815   :  { %v886_v56 = vmul.f32 %v1825_v54, %v883_v52  ;;  %vm891_vm10 = vweird.f32 %v1825_v54 }
 0x816   :  { %1826 = vrcp.f32 %v884_v55  ;;  %vm892_vm12 = vmor %vm890_vm11, %vm891_vm10  ;;  %v911_v6 = vand.u32 2147483648, %v884_v55  ;;  %v909_v11 = vand.u32 2147483647, %v884_v55  ;;  %vm905_vm15 = vweird.f32 %v884_v55 }
 0x817   :  { %v887_v57 = vsub.f32 1.0, %v886_v56 }
 0x818   :  { %v912_v13 = vor.u32 1.1754944e-38, %v911_v6  ;;  %vm910_vm2 = vcmp.eq.f32.partialorder %v909_v11, 8.507059e+37 }
 0x819   :  { %v888_v59 = vmul.f32 %v1825_v54, %v887_v57 }
 0x81b   :  { %v889_v61 = vadd.f32 %v1825_v54, %v888_v59 }
 0x81c   :  { %v1827_v62 = vpop.eup %1826 }
 0x81d   :  { %v901_v0 = vmul.f32 %v1827_v62, %v884_v55  ;;  %v893_v1 = vsel %vm892_vm12, %v1825_v54, %v889_v61  ;;  %vm906_vm14 = vweird.f32 %v1827_v62 }
 0x81e   :  { %v898_v2 = vsel %vm895_vm13, %v897_v63, %v893_v1  ;;  %vm907_vm1 = vmor %vm905_vm15, %vm906_vm14 }
 0x81f   :  { %v902_v3 = vsub.f32 1.0, %v901_v0  ;;  %v915_v5 = vmul.f32 2.0, %v898_v2  ;;  %v919_v26 = vmul.f32 %v898_v2, %v2344_v14  ;;  %v1664_v14 = vld [vmem:[#allocation3 + $0x20] sm:$0xff] }
 0x820   :  { %1603 = vmatmul.msk.bf16.gmra.mxu1 %vm275_vm0, %v1664_v14 }
 0x821   :  { %v1632_v7 = vadd.f32 -1.0, %v915_v5  ;;  %v903_v8 = vmul.f32 %v1827_v62, %v902_v3 }
 0x823   :  { %923 = vrot.lane.b32.xlu0 %v1632_v7, %s2134_s29  ;;  %v904_v12 = vadd.f32 %v1827_v62, %v903_v8 }
 0x825   :  { %v908_v15 = vsel %vm907_vm1, %v1827_v62, %v904_v12 }
 0x826   :  { %v913_v16 = vsel %vm910_vm2, %v912_v13, %v908_v15 }
 0x827   :  { %v916_v18 = vmul.f32 2.0, %v913_v16  ;;  %v920_v22 = vmul.f32 %v913_v16, %v2348_v28 }
 0x829   :  { %v1633_v19 = vadd.f32 -1.0, %v916_v18 }
 0x82b   :  { %925 = vrot.lane.b32.xlu1 %v1633_v19, %s2134_s29 }
 0x895   :  { %v924_v21 = vpop.permute.xlu0 %923 }
 0x896   :  { %v929_v23 = vmul.f32 %v924_v21, %v898_v2 }
 0x898   :  { %933 = vrot.lane.b32.xlu2 %v929_v23, %s2147_s8 }
 0x89d   :  { %v926_v24 = vpop.permute.xlu1 %925  ;;  %v454_v40 = vpop.f32.mrf.mxu1 }
 0x89e   :  { %v930_v25 = vmul.f32 %v926_v24, %v913_v16  ;;  %v455_v43 = vadd.f32 %v454_v40, %v329_v39 }
 0x8a0   :  { %935 = vrot.lane.b32.xlu0 %v930_v25, %s2147_s8  ;;  %v486_v45 = vadd.f32 %v2289_v20, %v455_v43 }
 0x8a5   :  { %v456_v42 = vpop.f32.mrf.mxu1 }
 0x8a6   :  { %v457_v44 = vadd.f32 %v456_v42, %v331_v41 }
 0x8a8   :  { %v487_v46 = vadd.f32 %v2289_v20, %v457_v44 }
 0x8aa   :  { %v1705_v47 = vpack.c.bf16 %v487_v46, %v486_v45 }
 0x8ac   :  { %v1740_v48 = vunpack.c.l.bf16 %v1705_v47  ;;  %v1741_v9 = vunpack.c.h.bf16 %v1705_v47 }
 0x8f2   :  { %v934_v27 = vpop.permute.xlu2 %933 }
 0x8f3   :  { %v2366_v30 = vadd.f32 %v934_v27, %v919_v26 }
 0x8f5   :  { %1828 = vtanh.f32 %v2366_v30 }
 0x8fb   :  { %v1829_v10 = vpop.eup %1828 }
 0x8fc   :  { %945 = vrot.lane.b32.xlu1 %v1829_v10, %s2134_s29 }
 0x912   :  { %v936_v31 = vpop.permute.xlu0 %935 }
 0x913   :  { %v2371_v32 = vadd.f32 %v936_v31, %v920_v22 }
 0x915   :  { %1830 = vtanh.f32 %v2371_v32 }
 0x91b   :  { %v1831_v17 = vpop.eup %1830 }
 0x91c   :  { %947 = vrot.lane.b32.xlu2 %v1831_v17, %s2134_s29 }
 0x96e   :  { %v946_v34 = vpop.permute.xlu1 %945 }
 0x96f   :  { %v951_v36 = vmul.f32 %v946_v34, %v898_v2 }
 0x976   :  { %v948_v35 = vpop.permute.xlu2 %947 }
 0x977   :  { %v952_v37 = vmul.f32 %v948_v35, %v913_v16 }
 0x979   :  { %v958_v38 = vpack.c.bf16 %v952_v37, %v951_v36  ;;  %v1673_v37 = vld [vmem:[#allocation6 + $0x28] sm:$0xff] }
 0x97a   :  { %1556 = vmatmul.msk.bf16.gmra.mxu0 %vm275_vm0, %v1673_v37 }
 0x97b   :  { %960 = vrot.lane.b32.xlu0 %v958_v38, %s2147_s8 }
 0x9ed   :  { %v961_v28 = vpop.permute.xlu0 %960 }
 0x9ee   :  { %1634 = vmatmul.msk.bf16.vlgmr.msrb.gmra.mxu2 %vm275_vm0, %v961_v28 }
 0x9f7   :  { %v334_v42 = vpop.f32.mrf.mxu0 }
 0x9ff   :  { %v336_v44 = vpop.f32.mrf.mxu0 }
 0xa71   :  { %v974_v49 = vpop.f32.mrf.mxu2 }
 0xa72   :  { %v979_v4 = vadd.f32 %v1740_v48, %v974_v49 }
 0xa74   :  { %v1635_v50 = vmul.f32 -1.442695, %v979_v4 }
 0xa76   :  { %1832 = vpow2.f32 %v1635_v50 }
 0xa79   :  { %v976_v51 = vpop.f32.mrf.mxu2 }
 0xa7a   :  { %v980_v52 = vadd.f32 %v1741_v9, %v976_v51 }
 0xa7c   :  { %v1833_v53 = vpop.eup %1832  ;;  %v1636_v54 = vmul.f32 -1.442695, %v980_v52 }
 0xa7d   :  { %v987_v55 = vadd.f32 1.0, %v1833_v53 }
 0xa7e   :  { %1834 = vpow2.f32 %v1636_v54 }
 0xa7f   :  { %1836 = vrcp.f32 %v987_v55  ;;  %v1000_v61 = vand.u32 2147483648, %v987_v55  ;;  %v998_v63 = vand.u32 2147483647, %v987_v55  ;;  %vm994_vm4 = vweird.f32 %v987_v55 }
 0xa81   :  { %v1001_v2 = vor.u32 1.1754944e-38, %v1000_v61  ;;  %vm999_vm6 = vcmp.eq.f32.partialorder %v998_v63, 8.507059e+37 }
 0xa84   :  { %v1835_v56 = vpop.eup %1834 }
 0xa85   :  { %v1837_v57 = vpop.eup %1836  ;;  %v988_v58 = vadd.f32 1.0, %v1835_v56 }
 0xa86   :  { %v990_v59 = vmul.f32 %v1837_v57, %v987_v55  ;;  %vm995_vm3 = vweird.f32 %v1837_v57 }
 0xa87   :  { %1838 = vrcp.f32 %v988_v58  ;;  %vm996_vm5 = vmor %vm994_vm4, %vm995_vm3  ;;  %v1015_v11 = vand.u32 2147483648, %v988_v58  ;;  %v1013_v15 = vand.u32 2147483647, %v988_v58  ;;  %vm1009_vm8 = vweird.f32 %v988_v58 }
 0xa88   :  { %v991_v60 = vsub.f32 1.0, %v990_v59 }
 0xa89   :  { %v1016_v18 = vor.u32 1.1754944e-38, %v1015_v11  ;;  %vm1014_vm10 = vcmp.eq.f32.partialorder %v1013_v15, 8.507059e+37 }
 0xa8a   :  { %v992_v62 = vmul.f32 %v1837_v57, %v991_v60 }
 0xa8c   :  { %v993_v0 = vadd.f32 %v1837_v57, %v992_v62 }
 0xa8d   :  { %v1839_v1 = vpop.eup %1838 }
 0xa8e   :  { %v1005_v3 = vmul.f32 %v1839_v1, %v988_v58  ;;  %v997_v5 = vsel %vm996_vm5, %v1837_v57, %v993_v0  ;;  %vm1010_vm7 = vweird.f32 %v1839_v1 }
 0xa8f   :  { %v1002_v6 = vsel %vm999_vm6, %v1001_v2, %v997_v5  ;;  %vm1011_vm9 = vmor %vm1009_vm8, %vm1010_vm7 }
 0xa90   :  { %v1006_v7 = vsub.f32 1.0, %v1005_v3  ;;  %v1019_v8 = vmul.f32 2.0, %v1002_v6  ;;  %v1023_v14 = vmul.f32 %v1002_v6, %v2366_v30 }
 0xa92   :  { %v1637_v12 = vadd.f32 -1.0, %v1019_v8  ;;  %v1007_v13 = vmul.f32 %v1839_v1, %v1006_v7 }
 0xa94   :  { %1027 = vrot.lane.b32.xlu1 %v1637_v12, %s2134_s29  ;;  %v1008_v16 = vadd.f32 %v1839_v1, %v1007_v13 }
 0xa96   :  { %v1012_v19 = vsel %vm1011_vm9, %v1839_v1, %v1008_v16 }
 0xa97   :  { %v1017_v21 = vsel %vm1014_vm10, %v1016_v18, %v1012_v19 }
 0xa98   :  { %v1020_v23 = vmul.f32 2.0, %v1017_v21  ;;  %v1024_v22 = vmul.f32 %v1017_v21, %v2371_v32  ;;  %v1665_v32 = vld [vmem:[#allocation3 + $0x28] sm:$0xff] }
 0xa99   :  { %1604 = vmatmul.msk.bf16.gmra.mxu1 %vm275_vm0, %v1665_v32 }
 0xa9a   :  { %v1638_v24 = vadd.f32 -1.0, %v1020_v23 }
 0xa9c   :  { %1029 = vrot.lane.b32.xlu2 %v1638_v24, %s2134_s29 }
 0xaf6   :  { %v1030_v25 = vpop.permute.xlu2 %1029 }
 0xaf7   :  { %v1034_v26 = vmul.f32 %v1030_v25, %v1017_v21 }
 0xaf9   :  { %1039 = vrot.lane.b32.xlu1 %v1034_v26, %s2147_s8 }
 0xb06   :  { %v1028_v27 = vpop.permute.xlu1 %1027 }
 0xb07   :  { %v1033_v10 = vmul.f32 %v1028_v27, %v1002_v6 }
 0xb09   :  { %1037 = vrot.lane.b32.xlu0 %v1033_v10, %s2147_s8 }
 0xb16   :  { %v459_v43 = vpop.f32.mrf.mxu1 }
 0xb17   :  { %v460_v46 = vadd.f32 %v459_v43, %v334_v42 }
 0xb19   :  { %v488_v48 = vadd.f32 %v2289_v20, %v460_v46 }
 0xb1e   :  { %v461_v45 = vpop.f32.mrf.mxu1 }
 0xb1f   :  { %v462_v47 = vadd.f32 %v461_v45, %v336_v44 }
 0xb21   :  { %v489_v49 = vadd.f32 %v2289_v20, %v462_v47 }
 0xb23   :  { %v1710_v4 = vpack.c.bf16 %v489_v49, %v488_v48 }
 0xb25   :  { %v1744_v50 = vunpack.c.l.bf16 %v1710_v4  ;;  %v1745_v53 = vunpack.c.h.bf16 %v1710_v4  ;;  %v1880_v4 = vld [vmem:[%s2476_s6] ss:$0 sm:$0xff] }
 0xb6b   :  { %v1040_v31 = vpop.permute.xlu1 %1039 }
 0xb6c   :  { %v2386_v17 = vadd.f32 %v1040_v31, %v1024_v22 }
 0xb6e   :  { %1840 = vtanh.f32 %v2386_v17 }
 0xb74   :  { %v1841_v33 = vpop.eup %1840 }
 0xb75   :  { %1051 = vrot.lane.b32.xlu0 %v1841_v33, %s2134_s29 }
 0xb7b   :  { %v1038_v34 = vpop.permute.xlu0 %1037 }
 0xb7c   :  { %v2391_v35 = vadd.f32 %v1038_v34, %v1023_v14 }
 0xb7e   :  { %1842 = vtanh.f32 %v2391_v35 }
 0xb84   :  { %v1843_v36 = vpop.eup %1842 }
 0xb85   :  { %1049 = vrot.lane.b32.xlu2 %v1843_v36, %s2134_s29 }
 0xbdf   :  { %v1050_v38 = vpop.permute.xlu2 %1049 }
 0xbe0   :  { %v1055_v39 = vmul.f32 %v1050_v38, %v1002_v6 }
 0xbe7   :  { %v1052_v28 = vpop.permute.xlu0 %1051 }
 0xbe8   :  { %v1056_v40 = vmul.f32 %v1052_v28, %v1017_v21 }
 0xbea   :  { %v1062_v41 = vpack.c.bf16 %v1056_v40, %v1055_v39  ;;  %v1674_v39 = vld [vmem:[#allocation6 + $0x30] sm:$0xff] }
 0xbeb   :  { %1557 = vmatmul.msk.bf16.gmra.mxu0 %vm275_vm0, %v1674_v39 }
 0xbec   :  { %1064 = vrot.lane.b32.xlu1 %v1062_v41, %s2147_s8 }
 0xc5e   :  { %v1065_v30 = vpop.permute.xlu1 %1064 }
 0xc5f   :  { %1639 = vmatmul.msk.bf16.vlgmr.msrb.gmra.mxu3 %vm275_vm0, %v1065_v30 }
 0xc68   :  { %v339_v44 = vpop.f32.mrf.mxu0 }
 0xc70   :  { %v341_v46 = vpop.f32.mrf.mxu0 }
 0xce2   :  { %v1078_v9 = vpop.f32.mrf.mxu3 }
 0xce3   :  { %v1083_v51 = vadd.f32 %v1744_v50, %v1078_v9 }
 0xce5   :  { %v1640_v52 = vmul.f32 -1.442695, %v1083_v51 }
 0xce7   :  { %1844 = vpow2.f32 %v1640_v52 }
 0xcea   :  { %v1080_v54 = vpop.f32.mrf.mxu3 }
 0xceb   :  { %v1084_v55 = vadd.f32 %v1745_v53, %v1080_v54 }
 0xced   :  { %v1845_v56 = vpop.eup %1844  ;;  %v1641_v57 = vmul.f32 -1.442695, %v1084_v55 }
 0xcee   :  { %v1091_v58 = vadd.f32 1.0, %v1845_v56 }
 0xcef   :  { %1846 = vpow2.f32 %v1641_v57 }
 0xcf0   :  { %1848 = vrcp.f32 %v1091_v58  ;;  %v1104_v63 = vand.u32 2147483648, %v1091_v58  ;;  %v1102_v1 = vand.u32 2147483647, %v1091_v58  ;;  %vm1098_vm12 = vweird.f32 %v1091_v58 }
 0xcf2   :  { %v1105_v5 = vor.u32 1.1754944e-38, %v1104_v63  ;;  %vm1103_vm14 = vcmp.eq.f32.partialorder %v1102_v1, 8.507059e+37 }
 0xcf5   :  { %v1847_v59 = vpop.eup %1846 }
 0xcf6   :  { %v1849_v60 = vpop.eup %1848  ;;  %v1092_v61 = vadd.f32 1.0, %v1847_v59 }
 0xcf7   :  { %v1094_v62 = vmul.f32 %v1849_v60, %v1091_v58  ;;  %vm1099_vm11 = vweird.f32 %v1849_v60 }
 0xcf8   :  { %1850 = vrcp.f32 %v1092_v61  ;;  %vm1100_vm13 = vmor %vm1098_vm12, %vm1099_vm11  ;;  %v1119_v13 = vand.u32 2147483648, %v1092_v61  ;;  %v1117_v18 = vand.u32 2147483647, %v1092_v61  ;;  %vm1113_vm1 = vweird.f32 %v1092_v61 }
 0xcf9   :  { %v1095_v20 = vsub.f32 1.0, %v1094_v62 }
 0xcfa   :  { %v1120_v21 = vor.u32 1.1754944e-38, %v1119_v13  ;;  %vm1118_vm3 = vcmp.eq.f32.partialorder %v1117_v18, 8.507059e+37 }
 0xcfb   :  { %v1096_v0 = vmul.f32 %v1849_v60, %v1095_v20 }
 0xcfd   :  { %v1097_v2 = vadd.f32 %v1849_v60, %v1096_v0 }
 0xcfe   :  { %v1851_v3 = vpop.eup %1850 }
 0xcff   :  { %v1109_v6 = vmul.f32 %v1851_v3, %v1092_v61  ;;  %v1101_v7 = vsel %vm1100_vm13, %v1849_v60, %v1097_v2  ;;  %vm1114_vm15 = vweird.f32 %v1851_v3 }
 0xd00   :  { %v1106_v8 = vsel %vm1103_vm14, %v1105_v5, %v1101_v7  ;;  %vm1115_vm2 = vmor %vm1113_vm1, %vm1114_vm15 }
 0xd01   :  { %v1110_v11 = vsub.f32 1.0, %v1109_v6  ;;  %v1123_v12 = vmul.f32 2.0, %v1106_v8  ;;  %v1127_v33 = vmul.f32 %v1106_v8, %v2391_v35  ;;  %v1666_v35 = vld [vmem:[#allocation3 + $0x30] sm:$0xff] }
 0xd02   :  { %1605 = vmatmul.msk.bf16.gmra.mxu1 %vm275_vm0, %v1666_v35 }
 0xd03   :  { %v1642_v15 = vadd.f32 -1.0, %v1123_v12  ;;  %v1111_v16 = vmul.f32 %v1851_v3, %v1110_v11 }
 0xd05   :  { %1131 = vrot.lane.b32.xlu2 %v1642_v15, %s2134_s29  ;;  %v1112_v19 = vadd.f32 %v1851_v3, %v1111_v16 }
 0xd07   :  { %v1116_v23 = vsel %vm1115_vm2, %v1851_v3, %v1112_v19 }
 0xd08   :  { %v1121_v24 = vsel %vm1118_vm3, %v1120_v21, %v1116_v23 }
 0xd09   :  { %v1124_v25 = vmul.f32 2.0, %v1121_v24  ;;  %v1128_v36 = vmul.f32 %v1121_v24, %v2386_v17 }
 0xd0b   :  { %v1643_v26 = vadd.f32 -1.0, %v1124_v25 }
 0xd0d   :  { %1133 = vrot.lane.b32.xlu0 %v1643_v26, %s2134_s29 }
 0xd5f   :  { %v1132_v27 = vpop.permute.xlu2 %1131 }
 0xd60   :  { %v1137_v10 = vmul.f32 %v1132_v27, %v1106_v8 }
 0xd62   :  { %1141 = vrot.lane.b32.xlu1 %v1137_v10, %s2147_s8 }
 0xd7f   :  { %v1134_v22 = vpop.permute.xlu0 %1133  ;;  %v464_v45 = vpop.f32.mrf.mxu1 }
 0xd80   :  { %v1138_v31 = vmul.f32 %v1134_v22, %v1121_v24  ;;  %v465_v48 = vadd.f32 %v464_v45, %v339_v44 }
 0xd82   :  { %1143 = vrot.lane.b32.xlu2 %v1138_v31, %s2147_s8  ;;  %v490_v50 = vadd.f32 %v1880_v4, %v465_v48 }
 0xd87   :  { %v466_v47 = vpop.f32.mrf.mxu1 }
 0xd88   :  { %v467_v49 = vadd.f32 %v466_v47, %v341_v46 }
 0xd8a   :  { %v491_v9 = vadd.f32 %v1880_v4, %v467_v49  ;;  %v1753_v49 = vunpack.c.h.bf16 %v2295_v29 }
 0xd8c   :  { %v1715_v51 = vpack.c.bf16 %v491_v9, %v490_v50 }
 0xd8e   :  { %v1748_v52 = vunpack.c.l.bf16 %v1715_v51  ;;  %v1749_v56 = vunpack.c.h.bf16 %v1715_v51 }
 0xdd4   :  { %v1142_v14 = vpop.permute.xlu1 %1141 }
 0xdd5   :  { %v2406_v34 = vadd.f32 %v1142_v14, %v1127_v33 }
 0xdd7   :  { %1852 = vtanh.f32 %v2406_v34 }
 0xddc   :  { %v1144_v37 = vpop.permute.xlu2 %1143 }
 0xddd   :  { %v1853_v32 = vpop.eup %1852  ;;  %v2410_v38 = vadd.f32 %v1144_v37, %v1128_v36 }
 0xdde   :  { %1153 = vrot.lane.b32.xlu0 %v1853_v32, %s2134_s29 }
 0xddf   :  { %1854 = vtanh.f32 %v2410_v38 }
 0xde5   :  { %v1855_v28 = vpop.eup %1854 }
 0xde6   :  { %1155 = vrot.lane.b32.xlu1 %v1855_v28, %s2134_s29 }
 0xe50   :  { %v1154_v40 = vpop.permute.xlu0 %1153 }
 0xe51   :  { %v1159_v17 = vmul.f32 %v1154_v40, %v1106_v8 }
 0xe58   :  { %v1156_v41 = vpop.permute.xlu1 %1155 }
 0xe59   :  { %v1160_v30 = vmul.f32 %v1156_v41, %v1121_v24 }
 0xe5b   :  { %v1166_v42 = vpack.c.bf16 %v1160_v30, %v1159_v17 }
 0xe5d   :  { %1168 = vrot.lane.b32.xlu2 %v1166_v42, %s2147_s8 }
 0xeb7   :  { %v1169_v43 = vpop.permute.xlu2 %1168 }
 0xeb8   :  { %1644 = vmatmul.msk.bf16.vlgmr.msra.gmra.mxu2 %vm275_vm0, %v1169_v43 }
 0xf3b   :  { %v1182_v53 = vpop.f32.mrf.mxu2 }
 0xf3c   :  { %v1187_v54 = vadd.f32 %v1748_v52, %v1182_v53 }
 0xf3e   :  { %v1645_v55 = vmul.f32 -1.442695, %v1187_v54 }
 0xf40   :  { %1856 = vpow2.f32 %v1645_v55 }
 0xf43   :  { %v1184_v57 = vpop.f32.mrf.mxu2 }
 0xf44   :  { %v1188_v58 = vadd.f32 %v1749_v56, %v1184_v57 }
 0xf46   :  { %v1857_v59 = vpop.eup %1856  ;;  %v1646_v60 = vmul.f32 -1.442695, %v1188_v58 }
 0xf47   :  { %v1195_v61 = vadd.f32 1.0, %v1857_v59 }
 0xf48   :  { %1858 = vpow2.f32 %v1646_v60 }
 0xf49   :  { %1860 = vrcp.f32 %v1195_v61  ;;  %v1208_v2 = vand.u32 2147483648, %v1195_v61  ;;  %v1206_v5 = vand.u32 2147483647, %v1195_v61  ;;  %vm1202_vm5 = vweird.f32 %v1195_v61 }
 0xf4b   :  { %v1209_v8 = vor.u32 1.1754944e-38, %v1208_v2  ;;  %vm1207_vm7 = vcmp.eq.f32.partialorder %v1206_v5, 8.507059e+37 }
 0xf4e   :  { %v1859_v62 = vpop.eup %1858 }
 0xf4f   :  { %v1861_v20 = vpop.eup %1860  ;;  %v1196_v63 = vadd.f32 1.0, %v1859_v62 }
 0xf50   :  { %v1198_v0 = vmul.f32 %v1861_v20, %v1195_v61  ;;  %vm1203_vm4 = vweird.f32 %v1861_v20 }
 0xf51   :  { %1862 = vrcp.f32 %v1196_v63  ;;  %vm1204_vm6 = vmor %vm1202_vm5, %vm1203_vm4  ;;  %v1223_v18 = vand.u32 2147483648, %v1196_v63  ;;  %v1221_v23 = vand.u32 2147483647, %v1196_v63  ;;  %vm1217_vm9 = vweird.f32 %v1196_v63 }
 0xf52   :  { %v1199_v1 = vsub.f32 1.0, %v1198_v0 }
 0xf53   :  { %v1224_v25 = vor.u32 1.1754944e-38, %v1223_v18  ;;  %vm1222_vm11 = vcmp.eq.f32.partialorder %v1221_v23, 8.507059e+37 }
 0xf54   :  { %v1200_v3 = vmul.f32 %v1861_v20, %v1199_v1 }
 0xf56   :  { %v1201_v6 = vadd.f32 %v1861_v20, %v1200_v3 }
 0xf57   :  { %v1863_v7 = vpop.eup %1862 }
 0xf58   :  { %v1213_v11 = vmul.f32 %v1863_v7, %v1196_v63  ;;  %v1205_v12 = vsel %vm1204_vm6, %v1861_v20, %v1201_v6  ;;  %vm1218_vm8 = vweird.f32 %v1863_v7 }
 0xf59   :  { %v1210_v13 = vsel %vm1207_vm7, %v1209_v8, %v1205_v12  ;;  %vm1219_vm10 = vmor %vm1217_vm9, %vm1218_vm8 }
 0xf5a   :  { %v1214_v15 = vsub.f32 1.0, %v1213_v11  ;;  %v1227_v16 = vmul.f32 2.0, %v1210_v13  ;;  %v1231_v37 = vmul.f32 %v1210_v13, %v2406_v34 }
 0xf5c   :  { %v1647_v19 = vadd.f32 -1.0, %v1227_v16  ;;  %v1215_v21 = vmul.f32 %v1863_v7, %v1214_v15 }
 0xf5e   :  { %1235 = vrot.lane.b32.xlu0 %v1647_v19, %s2134_s29  ;;  %v1216_v24 = vadd.f32 %v1863_v7, %v1215_v21 }
 0xf60   :  { %v1220_v26 = vsel %vm1219_vm10, %v1863_v7, %v1216_v24 }
 0xf61   :  { %v1225_v27 = vsel %vm1222_vm11, %v1224_v25, %v1220_v26 }
 0xf62   :  { %v1228_v10 = vmul.f32 2.0, %v1225_v27  ;;  %v1232_v35 = vmul.f32 %v1225_v27, %v2410_v38  ;;  %v1752_v38 = vunpack.c.l.bf16 %v2295_v29 }
 0xf64   :  { %v1648_v22 = vadd.f32 -1.0, %v1228_v10 }
 0xf66   :  { %1237 = vrot.lane.b32.xlu1 %v1648_v22, %s2134_s29 }
 0xfd0   :  { %v1236_v31 = vpop.permute.xlu0 %1235 }
 0xfd1   :  { %v1241_v33 = vmul.f32 %v1236_v31, %v1210_v13 }
 0xfd3   :  { %1245 = vrot.lane.b32.xlu2 %v1241_v33, %s2147_s8 }
 0xfd8   :  { %v1238_v14 = vpop.permute.xlu1 %1237 }
 0xfd9   :  { %v1242_v36 = vmul.f32 %v1238_v14, %v1225_v27 }
 0xfdb   :  { %1247 = vrot.lane.b32.xlu0 %v1242_v36, %s2147_s8 }
0x102d   :  { %v1246_v32 = vpop.permute.xlu2 %1245 }
0x102e   :  { %v2427_v28 = vadd.f32 %v1246_v32, %v1231_v37 }
0x1030   :  { %1864 = vtanh.f32 %v2427_v28 }
0x1036   :  { %v1865_v39 = vpop.eup %1864 }
0x1037   :  { %1257 = vrot.lane.b32.xlu1 %v1865_v39, %s2134_s29  ;;  %v1378_v39 = vld [vmem:[#allocation15 + $0x18] sm:$0xff] }
0x1038   :  { %1397 = vmatpush.msrb.mxu2 %v1378_v39 }
0x104d   :  { %v1248_v40 = vpop.permute.xlu0 %1247 }
0x104e   :  { %v2432_v41 = vadd.f32 %v1248_v40, %v1232_v35  ;;  %v1372_v35 = vld [vmem:[#allocation14 + $0x18] sm:$0xff]  ;;  %v1377_v40 = vld [vmem:[#allocation15 + $0x10] sm:$0xff] }
0x104f   :  { %1430 = vmatpush.msrb.mxu3 %v1372_v35  ;;  %1398 = vmatpush.msrb.mxu2 %v1377_v40 }
0x1050   :  { %1866 = vtanh.f32 %v2432_v41 }
0x1056   :  { %v1867_v17 = vpop.eup %1866 }
0x1057   :  { %1259 = vrot.lane.b32.xlu2 %v1867_v17, %s2134_s29  ;;  %v1370_v17 = vld [vmem:[#allocation14 + $0x8] sm:$0xff] }
0x10a9   :  { %v1258_v30 = vpop.permute.xlu1 %1257 }
0x10aa   :  { %v1263_v42 = vmul.f32 %v1258_v30, %v1210_v13  ;;  %v1375_v30 = vld [vmem:[#allocation15] sm:$0xff] }
0x10b1   :  { %v1260_v34 = vpop.permute.xlu2 %1259 }
0x10b2   :  { %v1264_v43 = vmul.f32 %v1260_v34, %v1225_v27  ;;  %v1369_v34 = vld [vmem:[#allocation14] sm:$0xff] }
0x10b4   :  { %v1270_v44 = vpack.c.bf16 %v1264_v43, %v1263_v42  ;;  %v1373_v42 = vld [vmem:[#allocation8] sm:$0xff]  ;;  %v1374_v43 = vld [vmem:[#allocation8 + $0x8] sm:$0xff] }
0x10b6   :  { %1272 = vrot.lane.b32.xlu0 %v1270_v44, %s2147_s8  ;;  %v1452_v44 = vld [vmem:[#allocation17 + $0x18] sm:$0xff] }
0x1128   :  { %v1273_v45 = vpop.permute.xlu0 %1272 }
0x1129   :  { %1649 = vmatmul.msk.bf16.vlgmr.msra.gmra.mxu3 %vm275_vm0, %v1273_v45  ;;  %v1451_v45 = vld [vmem:[#allocation17 + $0x10] sm:$0xff] }
0x11ac   :  { %v1286_v46 = vpop.f32.mrf.mxu3 }
0x11ad   :  { %v1291_v47 = vadd.f32 %v1752_v38, %v1286_v46  ;;  %v1450_v38 = vld [vmem:[#allocation17 + $0x8] sm:$0xff] }
0x11af   :  { %v1650_v48 = vmul.f32 -1.442695, %v1291_v47 }
0x11b1   :  { %1868 = vpow2.f32 %v1650_v48  ;;  %v1449_v48 = vld [vmem:[#allocation17] sm:$0xff] }
0x11b4   :  { %v1288_v4 = vpop.f32.mrf.mxu3 }
0x11b5   :  { %v1292_v50 = vadd.f32 %v1753_v49, %v1288_v4  ;;  %v1782_v4 = vld [vmem:[%s2479_s9] ss:$0 sm:$0xff]  ;;  %s2148_s9 = smov [#allocation18]  }
0x11b6   :  { %s1492_s0 = sshll.u32 %s2148_s9, 4  ;;  %s1493_s0 = int_to_ptr.vmem [resolvable:$true] %s1492_s0 }
0x11b7   :  { %v1869_v9 = vpop.eup %1868  ;;  %v1651_v51 = vmul.f32 -1.442695, %v1292_v50 }
0x11b8   :  { %v1299_v52 = vadd.f32 1.0, %v1869_v9 }
0x11b9   :  { %1870 = vpow2.f32 %v1651_v51 }
0x11ba   :  { %1872 = vrcp.f32 %v1299_v52  ;;  %v1312_v58 = vand.u32 2147483648, %v1299_v52  ;;  %v1310_v60 = vand.u32 2147483647, %v1299_v52  ;;  %vm1306_vm13 = vweird.f32 %v1299_v52 }
0x11bc   :  { %v1313_v62 = vor.u32 1.1754944e-38, %v1312_v58  ;;  %vm1311_vm15 = vcmp.eq.f32.partialorder %v1310_v60, 8.507059e+37  ;;  %v1783_v58 = vld [vmem:[%s2481_s11] ss:$0 sm:$0xff] }
0x11bf   :  { %v1871_v53 = vpop.eup %1870 }
0x11c0   :  { %v1873_v54 = vpop.eup %1872  ;;  %v1300_v55 = vadd.f32 1.0, %v1871_v53 }
0x11c1   :  { %v1302_v56 = vmul.f32 %v1873_v54, %v1299_v52  ;;  %vm1307_vm12 = vweird.f32 %v1873_v54 }
0x11c2   :  { %1874 = vrcp.f32 %v1300_v55  ;;  %vm1308_vm14 = vmor %vm1306_vm13, %vm1307_vm12  ;;  %v1327_v3 = vand.u32 2147483648, %v1300_v55  ;;  %v1325_v7 = vand.u32 2147483647, %v1300_v55  ;;  %vm1321_vm2 = vweird.f32 %v1300_v55 }
0x11c3   :  { %v1303_v57 = vsub.f32 1.0, %v1302_v56 }
0x11c4   :  { %v1328_v11 = vor.u32 1.1754944e-38, %v1327_v3  ;;  %vm1326_vm4 = vcmp.eq.f32.partialorder %v1325_v7, 8.507059e+37 }
0x11c5   :  { %v1304_v59 = vmul.f32 %v1873_v54, %v1303_v57 }
0x11c7   :  { %v1305_v61 = vadd.f32 %v1873_v54, %v1304_v59 }
0x11c8   :  { %v1875_v29 = vpop.eup %1874 }
0x11c9   :  { %v1317_v20 = vmul.f32 %v1875_v29, %v1300_v55  ;;  %v1309_v63 = vsel %vm1308_vm14, %v1873_v54, %v1305_v61  ;;  %vm1322_vm1 = vweird.f32 %v1875_v29 }
0x11ca   :  { %v1314_v0 = vsel %vm1311_vm15, %v1313_v62, %v1309_v63  ;;  %vm1323_vm3 = vmor %vm1321_vm2, %vm1322_vm1 }
0x11cb   :  { %v1318_v1 = vsub.f32 1.0, %v1317_v20  ;;  %v1331_v2 = vmul.f32 2.0, %v1314_v0  ;;  %v1335_v10 = vmul.f32 %v1314_v0, %v2427_v28  ;;  %v1371_v28 = vld [vmem:[#allocation14 + $0x10] sm:$0xff] }
0x11cc   :  { %1431 = vmatpush.msrb.mxu3 %v1371_v28 }
0x11cd   :  { %v1652_v5 = vadd.f32 -1.0, %v1331_v2  ;;  %v1319_v6 = vmul.f32 %v1875_v29, %v1318_v1 }
0x11ce   :  { %1432 = vmatpush.msrb.mxu3 %v1370_v17 }
0x11cf   :  { %1339 = vrot.lane.b32.xlu1 %v1652_v5, %s2134_s29  ;;  %v1320_v8 = vadd.f32 %v1875_v29, %v1319_v6 }
0x11d0   :  { %1433 = vmatpush.msrb.mxu3 %v1369_v34 }
0x11d1   :  { %v1324_v12 = vsel %vm1323_vm3, %v1875_v29, %v1320_v8 }
0x11d2   :  { %v1329_v13 = vsel %vm1326_vm4, %v1328_v11, %v1324_v12 }
0x11d3   :  { %v1332_v15 = vmul.f32 2.0, %v1329_v13  ;;  %v1336_v24 = vmul.f32 %v1329_v13, %v2432_v41  ;;  %v1376_v41 = vld [vmem:[#allocation15 + $0x8] sm:$0xff] }
0x11d4   :  { %1399 = vmatpush.msrb.mxu2 %v1376_v41 }
0x11d5   :  { %v1653_v16 = vadd.f32 -1.0, %v1332_v15 }
0x11d6   :  { %1400 = vmatpush.msrb.mxu2 %v1375_v30 }
0x11d7   :  { %1341 = vrot.lane.b32.xlu2 %v1653_v16, %s2134_s29  ;;  %1654 = vmatmul.msk.f32.vlgmr.msrb.gmra.mxu2 %vm275_vm0, %v1373_v42 }
0x11d8   :  { %1475 = vmatpush.msra.mxu2 %v1452_v44 }
0x11da   :  { %1476 = vmatpush.msra.mxu2 %v1451_v45 }
0x11dc   :  { %1477 = vmatpush.msra.mxu2 %v1450_v38 }
0x11de   :  { %1478 = vmatpush.msra.mxu2 %v1449_v48 }
0x11df   :  { %1655 = vmatmul.msk.f32.gmra.mxu2 %vm275_vm0, %v1374_v43 }
0x1231   :  { %v1342_v18 = vpop.permute.xlu2 %1341 }
0x1232   :  { %v1346_v19 = vmul.f32 %v1342_v18, %v1329_v13 }
0x1234   :  { %1351 = vrot.lane.b32.xlu1 %v1346_v19, %s2147_s8 }
0x1241   :  { %v1340_v21 = vpop.permute.xlu1 %1339 }
0x1242   :  { %v1345_v23 = vmul.f32 %v1340_v21, %v1314_v0 }
0x1244   :  { %1349 = vrot.lane.b32.xlu0 %v1345_v23, %s2147_s8 }
0x125a   :  { %v1402_v49 = vpop.f32.mrf.mxu2 }
0x1262   :  { %v1405_v53 = vpop.f32.mrf.mxu2 }
0x12a6   :  { %v1352_v25 = vpop.permute.xlu1 %1351 }
0x12a7   :  { %v1356_v26 = vadd.f32 %v1352_v25, %v1336_v24 }
0x12a9   :  { %1876 = vtanh.f32 %v1356_v26 }
0x12af   :  { %v1877_v27 = vpop.eup %1876 }
0x12b0   :  { %1363 = vrot.lane.b32.xlu0 %v1877_v27, %s2134_s29 }
0x12b6   :  { %v1350_v22 = vpop.permute.xlu0 %1349 }
0x12b7   :  { %v1355_v31 = vadd.f32 %v1350_v22, %v1335_v10 }
0x12b9   :  { %1878 = vtanh.f32 %v1355_v31 }
0x12bf   :  { %v1879_v33 = vpop.eup %1878 }
0x12c0   :  { %1361 = vrot.lane.b32.xlu2 %v1879_v33, %s2134_s29 }
0x131a   :  { %v1362_v14 = vpop.permute.xlu2 %1361 }
0x131b   :  { %v1367_v36 = vmul.f32 %v1362_v14, %v1314_v0 }
0x131d   :  { %1410 = vrot.lane.b32.xlu1 %v1367_v36, %s2147_s8 }
0x1322   :  { %v1364_v37 = vpop.permute.xlu0 %1363 }
0x1323   :  { %v1368_v32 = vmul.f32 %v1364_v37, %v1329_v13 }
0x1325   :  { %1412 = vrot.lane.b32.xlu2 %v1368_v32, %s2147_s8 }
0x137f   :  { %v1413_v47 = vpop.permute.xlu2 %1412 }
0x138f   :  { %v1411_v46 = vpop.permute.xlu1 %1410 }
0x1390   :  { %1656 = vmatmul.msk.f32.vlgmr.msrb.gmra.mxu3 %vm275_vm0, %v1411_v46 }
0x1398   :  { %1657 = vmatmul.msk.f32.gmra.mxu3 %vm275_vm0, %v1413_v47 }
0x1413   :  { %v1435_v50 = vpop.f32.mrf.mxu3 }
0x1414   :  { %v1436_v9 = vadd.f32 %v1435_v50, %v1402_v49 }
0x1416   :  { %v1445_v51 = vadd.f32 %v1782_v4, %v1436_v9 }
0x1418   :  { %v1447_v52 = vmax.f32 %v1445_v51, 0.0 }
0x141a   :  { %1658 = vmatmul.msk.f32.vlgmr.msra.gmra.mxu2 %vm275_vm0, %v1447_v52 }
0x141b   :  { %v1438_v54 = vpop.f32.mrf.mxu3 }
0x141c   :  { %v1439_v55 = vadd.f32 %v1438_v54, %v1405_v53 }
0x141e   :  { %v1446_v56 = vadd.f32 %v1782_v4, %v1439_v55 }
0x1420   :  { %v1448_v57 = vmax.f32 %v1446_v56, 0.0 }
0x1422   :  { %1659 = vmatmul.msk.f32.gmra.mxu2 %vm275_vm0, %v1448_v57 }
0x149d   :  { %v1480_v59 = vpop.f32.mrf.mxu2 }
0x149e   :  { %v1481_v60 = vadd.f32 %v1783_v58, %v1480_v59 }
0x14a0   :  { %1486 = vst.msk [vmem:[#allocation18] sm:$0xff] %vm275_vm0, %v1481_v60 }
0x14a5   :  { %v1483_v61 = vpop.f32.mrf.mxu2 }
0x14a6   :  { %v1484_v29 = vadd.f32 %v1783_v58, %v1483_v61 }
0x14a8   :  { %1487 = vst.msk [vmem:[#allocation18 + $0x8] sm:$0xff] %vm275_vm0, %v1484_v29 }
0x14a9   :  { %1500 = dma.vmem_to_hbm [thread:$0]  %s1493_s0, 256, %s1495_s1, [#allocation5], %s2139_s25, %s2139_s25, %s2140_s26  }
0x14aa   :  { %2131 = dma.done.wait [#allocation5], 256  }
0x14ab   :  { %2132 = vsyncadd [#allocation5], 4294967040 }
0x14ac   :  { %1505 = vsyncpa [#allocation4], 1 }
0x14ad   :  { %1506 = vsyncpa [#allocation7], 1 }
0x14ae   :  { %1507 = vsyncpa [#allocation10], 1 }
0x14af   :  { %1508 = vsyncpa [#allocation13], 1 }
0x14b0   :  { %1509 = vsyncpa [#allocation16], 1 }
0x14b1   :  { %1510 = vsyncpa [#allocation5], 1 }

</bundles_post_ra>
